<compile_context>
chip_gen: v7x
topology: tpu7x:2x2x1
jax: 0.10.0
libtpu: 0.0.40
codegen_flags: <defaults>
</compile_context>

<pallas_src>
import functools
import math

import jax
import jax.numpy as jnp
from jax.experimental import pallas as pl
from jax.experimental.pallas import tpu as pltpu

_VMEM_LIMIT = 48 * 1024 * 1024      # scoped VMEM limit (safe on v5e/v6e/v7x)
_STEP_BUDGET = 24 * 1024 * 1024     # target live bytes per grid step


def _rup(x, m):
    return ((x + m - 1) // m) * m


def _const_spec(shape):
    """BlockSpec with a constant index map (weights/scale/bias): single-buffered."""
    ndim = len(shape)

    def idx(i):
        return (0,) * ndim

    try:
        return pl.BlockSpec(shape, idx, pipeline_mode=pl.Buffered(1))
    except Exception:                       # older jax without pipeline_mode
        return pl.BlockSpec(shape, idx)


# ---------------------------------------------------------------------------
# Fused (matmul * scale + bias [+ residual] [ReLU]) kernel  ==  1x1 conv + BN
# ---------------------------------------------------------------------------
def _mm_bn_kernel(x_ref, w_ref, s_ref, b_ref, *rest, relu, has_res):
    if has_res:
        r_ref, o_ref = rest
    else:
        (o_ref,) = rest
        r_ref = None
    acc = jnp.dot(x_ref[...], w_ref[...], preferred_element_type=jnp.float32)
    y = acc * s_ref[...] + b_ref[...]
    if has_res:
        y = y + r_ref[...].astype(jnp.float32)
    if relu:
        y = jnp.maximum(y, 0.0)
    o_ref[...] = y.astype(o_ref.dtype)


def _choose_tm(m, k, n, has_res):
    """VMEM-budget-driven M tile: large tiles, >=2 grid steps, no whole-M fallback."""
    w_bytes = k * n * 2                      # weight is single-buffered (Buffered(1))
    tm = 1024
    while tm > 16:
        step = 2 * tm * (k + n * (2 if has_res else 1)) * 2 + w_bytes
        if step <= _STEP_BUDGET:
            break
        tm //= 2
    # keep at least 2 grid steps when M allows (v7x megacore sharding)
    while tm >= 32 and tm >= m and m > 16:
        tm //= 2
    m8 = _rup(m, 8)
    return max(8, min(tm, m8))


def _matmul_bn(x, w, scale, bias, residual=None, *, relu, out_dtype=jnp.bfloat16):
    """Fused (x @ w) * scale + bias [+ residual] [ReLU]  (conv-as-GEMM + BN)."""
    m, k = x.shape
    n = w.shape[1]
    has_res = residual is not None
    tm = _choose_tm(m, k, n, has_res)
    grid_m = -(-m // tm)
    m_pad = grid_m * tm
    if m_pad != m:                           # pad M to a tile multiple, slice after
        x = jnp.pad(x, ((0, m_pad - m), (0, 0)))
        if has_res:
            residual = jnp.pad(residual, ((0, m_pad - m), (0, 0)))
    in_specs = [
        pl.BlockSpec((tm, k), lambda i: (i, 0)),
        _const_spec((k, n)),
        _const_spec((1, n)),
        _const_spec((1, n)),
    ]
    args = [x, w, scale, bias]
    if has_res:
        in_specs.append(pl.BlockSpec((tm, n), lambda i: (i, 0)))
        args.append(residual)
    out = pl.pallas_call(
        functools.partial(_mm_bn_kernel, relu=relu, has_res=has_res),
        grid=(grid_m,),
        in_specs=in_specs,
        out_specs=pl.BlockSpec((tm, n), lambda i: (i, 0)),
        out_shape=jax.ShapeDtypeStruct((m_pad, n), out_dtype),
        compiler_params=pltpu.CompilerParams(
            dimension_semantics=("parallel",),
            vmem_limit_bytes=_VMEM_LIMIT),
    )(*args)
    return out[:m] if m_pad != m else out


# ---------------------------------------------------------------------------
# Stride-1 3x3 conv + BN (+ReLU):  im2col fused in-kernel (9 accumulated GEMMs)
# ---------------------------------------------------------------------------
def _conv3x3_kernel(x_ref, w_ref, s_ref, b_ref, o_ref, acc_ref, *, wp, lout, relu):
    # x_ref: (1, lin, Cin) zero-padded image flattened over (Hp, Wp).
    # Output row p = y*wp + x needs input row p + dy*wp + dx   (stride-1 conv).
    for t in range(9):
        off = (t // 3) * wp + (t % 3)
        tap = jnp.dot(x_ref[0, off:off + lout, :], w_ref[t],
                      preferred_element_type=jnp.float32)
        if t == 0:
            acc_ref[...] = tap
        else:
            acc_ref[...] += tap
    y = acc_ref[...] * s_ref[...] + b_ref[...]
    if relu:
        y = jnp.maximum(y, 0.0)
    o_ref[0] = y.astype(o_ref.dtype)


def conv3x3_bn(x, p, *, relu=True):
    """Stride-1 3x3 conv + folded BN (+ReLU), grid over batch, taps fused in-kernel."""
    b, h, w, cin = x.shape
    cout = p["w"].shape[-1]
    hp, wp = h + 2, w + 2
    lout = h * wp                            # flattened rows; junk cols sliced after
    lin = _rup(hp * wp + 2, 8)               # max tap offset 2*wp+2 must stay in range
    xp = jnp.pad(x, ((0, 0), (1, 1), (1, 1), (0, 0))).reshape(b, hp * wp, cin)
    xp = jnp.pad(xp, ((0, 0), (0, lin - hp * wp), (0, 0)))
    out = pl.pallas_call(
        functools.partial(_conv3x3_kernel, wp=wp, lout=lout, relu=relu),
        grid=(b,),
        in_specs=[
            pl.BlockSpec((1, lin, cin), lambda i: (i, 0, 0)),
            _const_spec((9, cin, cout)),
            _const_spec((1, cout)),
            _const_spec((1, cout)),
        ],
        out_specs=pl.BlockSpec((1, lout, cout), lambda i: (i, 0, 0)),
        out_shape=jax.ShapeDtypeStruct((b, lout, cout), jnp.bfloat16),
        scratch_shapes=[pltpu.VMEM((lout, cout), jnp.float32)],
        compiler_params=pltpu.CompilerParams(
            dimension_semantics=("parallel",),
            vmem_limit_bytes=_VMEM_LIMIT),
    )(xp, p["w"], p["s"], p["b"])
    # keep only the valid columns of each flattened output row group
    return out.reshape(b, h, wp, cout)[:, :, :w, :]


def conv3x3s2_bn_im2col(x, p):
    """Stride-2 3x3 stem conv (Cin=3): im2col stays in plain JAX (negligible bytes)."""
    b, h, w, c = x.shape
    ho, wo = (h - 1) // 2 + 1, (w - 1) // 2 + 1
    xp = jnp.pad(x, ((0, 0), (1, 1), (1, 1), (0, 0)))
    taps = [xp[:, dy:dy + 2 * (ho - 1) + 1:2, dx:dx + 2 * (wo - 1) + 1:2, :]
            for dy in range(3) for dx in range(3)]
    cols = jnp.concatenate(taps, axis=-1).reshape(b * ho * wo, 9 * c)
    y = _matmul_bn(cols, p["w"], p["s"], p["b"], relu=True)
    return y.reshape(b, ho, wo, p["w"].shape[1])


def conv1x1_bn(x, p, *, relu, residual=None):
    b, h, w, cin = x.shape
    n = p["w"].shape[1]
    r2 = residual.reshape(b * h * w, n) if residual is not None else None
    y = _matmul_bn(x.reshape(b * h * w, cin), p["w"], p["s"], p["b"], r2, relu=relu)
    return y.reshape(b, h, w, n)


def _avgpool(x, k):
    # TODO(synk): fuse the 2x2 pool into the following 1x1 conv kernel to save
    #             one HBM round trip; kept as a single fused XLA pass for now.
    b, h, w, c = x.shape
    x = x.reshape(b, h // k, k, w // k, k, c)
    return jnp.mean(x, axis=(2, 4), dtype=jnp.float32).astype(jnp.bfloat16)


# ---------------------------------------------------------------------------
# Bottleneck block
# ---------------------------------------------------------------------------
def bottleneck_forward(x, blk):
    stride = blk["stride"]
    out = conv1x1_bn(x, blk["c1"], relu=True)
    out = conv3x3_bn(out, blk["c2"], relu=True)
    if stride > 1:
        out = _avgpool(out, stride)
    if "down" in blk:
        idn = _avgpool(x, stride) if stride > 1 else x
        idn = conv1x1_bn(idn, blk["down"], relu=False)
    else:
        idn = x
    # bn3(conv3(out)) + identity, then ReLU — fused in one kernel
    return conv1x1_bn(out, blk["c3"], relu=True, residual=idn)


# ---------------------------------------------------------------------------
# AttentionPool2d: projections via the tiled GEMM kernel, softmax/context kernel
# ---------------------------------------------------------------------------
def _attn_ctx_kernel(q_ref, k_ref, v_ref, o_ref, *, scale):
    q = q_ref[0]                              # [H, 1, dh]  bf16
    k = k_ref[0]                              # [H, S, dh]  bf16
    v = v_ref[0]
    s = jnp.einsum("hqd,hkd->hqk", q, k,
                   preferred_element_type=jnp.float32) * scale   # MXU, [H,1,S]
    s = s - jnp.max(s, axis=-1, keepdims=True)
    p = jnp.exp(s)
    p = p / jnp.sum(p, axis=-1, keepdims=True)                   # exact softmax
    ctx = jnp.einsum("hqk,hkd->hqd", p.astype(v.dtype), v,
                     preferred_element_type=jnp.float32)         # MXU, [H,1,dh]
    o_ref[0] = ctx[:, 0, :].astype(o_ref.dtype)


def attention_pool(x_nhwc, ap, n_head):
    b, h, w, _ = x_nhwc.shape
    c = ap["embed_dim"]
    hw = h * w
    s = hw + 1
    # token prep (mean token + positional embedding) is cheap layout glue
    xs = x_nhwc.reshape(b, hw, -1)[..., :c].astype(jnp.float32)
    tokens = jnp.concatenate([jnp.mean(xs, axis=1, keepdims=True), xs], axis=1)
    tokens = (tokens + ap["pos"][None]).astype(jnp.bfloat16)     # [B, S, C]

    # q/k/v projections reuse the tiled GEMM kernel (scale = 1 -> plain linear)
    tok_flat = tokens.reshape(b * s, c)
    kp = _matmul_bn(tok_flat, ap["wk"], ap["ones_e"], ap["bk"], relu=False)
    vp = _matmul_bn(tok_flat, ap["wv"], ap["ones_e"], ap["bv"], relu=False)
    qp = _matmul_bn(tokens[:, 0, :], ap["wq"], ap["ones_e"], ap["bq"], relu=False)

    dh = c // n_head
    k4 = kp.reshape(b, s, n_head, dh).transpose(0, 2, 1, 3)      # [B, H, S, dh]
    v4 = vp.reshape(b, s, n_head, dh).transpose(0, 2, 1, 3)
    q4 = qp.reshape(b, n_head, 1, dh)

    ctx = pl.pallas_call(
        functools.partial(_attn_ctx_kernel, scale=1.0 / math.sqrt(dh)),
        grid=(b,),
        in_specs=[pl.BlockSpec((1, n_head, 1, dh), lambda i: (i, 0, 0, 0)),
                  pl.BlockSpec((1, n_head, s, dh), lambda i: (i, 0, 0, 0)),
                  pl.BlockSpec((1, n_head, s, dh), lambda i: (i, 0, 0, 0))],
        out_specs=pl.BlockSpec((1, n_head, dh), lambda i: (i, 0, 0)),
        out_shape=jax.ShapeDtypeStruct((b, n_head, dh), jnp.bfloat16),
        compiler_params=pltpu.CompilerParams(
            dimension_semantics=("parallel",),
            vmem_limit_bytes=_VMEM_LIMIT),
    )(q4, k4, v4)

    return _matmul_bn(ctx.reshape(b, c), ap["wc"], ap["ones_o"], ap["bc"],
                      relu=False, out_dtype=jnp.float32)


# ---------------------------------------------------------------------------
# parameters: torch-layout init  +  one-time prep (BN fold, pad to 128, bf16)
# ---------------------------------------------------------------------------
def init_params(key, layers_cfg, output_dim, heads, input_resolution, width):
    keys = iter(jax.random.split(key, 1024))
    nrm = lambda shape, s: s * jax.random.normal(next(keys), shape, jnp.float32)

    def bn(n):
        return {"gamma": 1.0 + 0.1 * nrm((n,), 1.0),
                "beta": 0.1 * nrm((n,), 1.0),
                "mean": 0.1 * nrm((n,), 1.0),
                "var": 1.0 + 0.1 * jnp.abs(nrm((n,), 1.0))}

    def conv(cout, cin, k):
        return nrm((cout, cin, k, k), 1.0 / math.sqrt(cin * k * k))

    p = {"conv1": conv(width // 2, 3, 3), "bn1": bn(width // 2),
         "conv2": conv(width // 2, width // 2, 3), "bn2": bn(width // 2),
         "conv3": conv(width, width // 2, 3), "bn3": bn(width)}

    inplanes = width
    all_layers = []
    for li, (blocks, planes) in enumerate(
            zip(layers_cfg, (width, width * 2, width * 4, width * 8))):
        layer_stride = 1 if li == 0 else 2
        layer = []
        for bi in range(blocks):
            s = layer_stride if bi == 0 else 1
            blk = {"stride": s,
                   "conv1": conv(planes, inplanes, 1), "bn1": bn(planes),
                   "conv2": conv(planes, planes, 3), "bn2": bn(planes),
                   "conv3": conv(planes * 4, planes, 1), "bn3": bn(planes * 4)}
            if s > 1 or inplanes != planes * 4:
                blk["down_conv"] = conv(planes * 4, inplanes, 1)
                blk["down_bn"] = bn(planes * 4)
            layer.append(blk)
            inplanes = planes * 4
        all_layers.append(layer)
    p["layers"] = all_layers

    embed_dim = width * 32
    spacial = input_resolution // 32
    p["attnpool"] = {
        "pos": nrm((spacial * spacial + 1, embed_dim), embed_dim ** -0.5),
        "q_w": nrm((embed_dim, embed_dim), embed_dim ** -0.5),
        "q_b": 0.02 * nrm((embed_dim,), 1.0),
        "k_w": nrm((embed_dim, embed_dim), embed_dim ** -0.5),
        "k_b": 0.02 * nrm((embed_dim,), 1.0),
        "v_w": nrm((embed_dim, embed_dim), embed_dim ** -0.5),
        "v_b": 0.02 * nrm((embed_dim,), 1.0),
        "c_w": nrm((output_dim, embed_dim), embed_dim ** -0.5),
        "c_b": 0.02 * nrm((output_dim,), 1.0),
    }
    return p


def _fold_bn(bn, cout_pad, eps=1e-5):
    scale = bn["gamma"] / jnp.sqrt(bn["var"] + eps)
    bias = bn["beta"] - bn["mean"] * scale
    pad = cout_pad - scale.shape[0]
    scale = jnp.pad(scale, (0, pad))          # padded channels: 0*acc + 0 == 0
    bias = jnp.pad(bias, (0, pad))
    return (scale.reshape(1, -1).astype(jnp.float32),
            bias.reshape(1, -1).astype(jnp.float32))


def _prep_conv1x1(w, bn):
    cout, cin = w.shape[0], w.shape[1]
    cin_pad, cout_pad = _rup(cin, 128), _rup(cout, 128)
    wm = jnp.pad(w.reshape(cout, cin).T,
                 ((0, cin_pad - cin), (0, cout_pad - cout)))      # [Cin_p, Cout_p]
    s, b = _fold_bn(bn, cout_pad)
    return {"w": wm.astype(jnp.bfloat16), "s": s, "b": b}


def _prep_conv3x3(w, bn):
    cout, cin = w.shape[0], w.shape[1]
    cin_pad, cout_pad = _rup(cin, 128), _rup(cout, 128)
    wm = jnp.pad(w.transpose(2, 3, 1, 0),
                 ((0, 0), (0, 0), (0, cin_pad - cin), (0, cout_pad - cout)))
    wm = wm.reshape(9, cin_pad, cout_pad)                         # tap-major (dy, dx)
    s, b = _fold_bn(bn, cout_pad)
    return {"w": wm.astype(jnp.bfloat16), "s": s, "b": b}


def _prep_conv3x3_im2col(w, bn):
    cout, cin = w.shape[0], w.shape[1]
    cout_pad = _rup(cout, 128)
    wm = jnp.pad(w.transpose(2, 3, 1, 0).reshape(9 * cin, cout),
                 ((0, 0), (0, cout_pad - cout)))
    s, b = _fold_bn(bn, cout_pad)
    return {"w": wm.astype(jnp.bfloat16), "s": s, "b": b}


def prepare_params(p):
    """One-time: fold BN, pad channels to 128, pre-transpose, cast weights to bf16."""
    pp = {"stem1": _prep_conv3x3_im2col(p["conv1"], p["bn1"]),
          "stem2": _prep_conv3x3(p["conv2"], p["bn2"]),
          "stem3": _prep_conv3x3(p["conv3"], p["bn3"]),
          "layers": []}
    for layer in p["layers"]:
        blks = []
        for blk in layer:
            b = {"stride": blk["stride"],
                 "c1": _prep_conv1x1(blk["conv1"], blk["bn1"]),
                 "c2": _prep_conv3x3(blk["conv2"], blk["bn2"]),
                 "c3": _prep_conv1x1(blk["conv3"], blk["bn3"])}
            if "down_conv" in blk:
                b["down"] = _prep_conv1x1(blk["down_conv"], blk["down_bn"])
            blks.append(b)
        pp["layers"].append(blks)
    ap = p["attnpool"]
    embed_dim = ap["q_w"].shape[0]
    pp["attnpool"] = {
        "embed_dim": embed_dim,
        "pos": ap["pos"].astype(jnp.float32),
        "wq": ap["q_w"].T.astype(jnp.bfloat16),
        "bq": ap["q_b"].reshape(1, -1).astype(jnp.float32),
        "wk": ap["k_w"].T.astype(jnp.bfloat16),
        "bk": ap["k_b"].reshape(1, -1).astype(jnp.float32),
        "wv": ap["v_w"].T.astype(jnp.bfloat16),
        "bv": ap["v_b"].reshape(1, -1).astype(jnp.float32),
        "wc": ap["c_w"].T.astype(jnp.bfloat16),
        "bc": ap["c_b"].reshape(1, -1).astype(jnp.float32),
        "ones_e": jnp.ones((1, embed_dim), jnp.float32),
        "ones_o": jnp.ones((1, ap["c_w"].shape[0]), jnp.float32),
    }
    return pp


# ---------------------------------------------------------------------------
# full forward
# ---------------------------------------------------------------------------
def modified_resnet_forward(x_nchw, pp, heads):
    x = jnp.transpose(x_nchw, (0, 2, 3, 1)).astype(jnp.bfloat16)   # NHWC, bf16
    # stem: three 3x3 conv+bn+relu, then 2x2 avg pool
    x = conv3x3s2_bn_im2col(x, pp["stem1"])                        # stride-2 stem conv
    x = conv3x3_bn(x, pp["stem2"], relu=True)
    x = conv3x3_bn(x, pp["stem3"], relu=True)
    x = _avgpool(x, 2)
    # residual layers
    for layer in pp["layers"]:
        for blk in layer:
            x = bottleneck_forward(x, blk)
    # attention pooling head
    return attention_pool(x, pp["attnpool"], heads)


if __name__ == "__main__":
    # small-but-consistent config: input 64x64 -> final 2x2 feature map,
    # width=16 -> embed_dim=512, heads=4 (head_dim=128), output_dim=32
    layers_cfg = (2, 1, 1, 1)
    output_dim = 32
    heads = 4
    input_resolution = 64
    width = 16
    batch = 2

    key = jax.random.PRNGKey(0)
    k_img, k_par = jax.random.split(key)
    x = jax.random.normal(
        k_img, (batch, 3, input_resolution, input_resolution), jnp.float32)

    params = init_params(k_par, layers_cfg, output_dim, heads,
                         input_resolution, width)
    pp = prepare_params(params)

    out = modified_resnet_forward(x, pp, heads)
    out = jax.block_until_ready(out)

    assert out.shape == (batch, output_dim), out.shape
    assert out.dtype == jnp.float32
    assert bool(jnp.all(jnp.isfinite(out)))
    print("KERNEL_OK")
</pallas_src>

<mosaic_0001>
module attributes {stable_mosaic.version = 11 : i64} {
  func.func @_mm_bn_kernel(%arg0: i32, %arg1: memref<1024x27xbf16, #tpu.memory_space<vmem>>, %arg2: memref<27x128xbf16, #tpu.memory_space<vmem>>, %arg3: memref<1x128xf32, #tpu.memory_space<vmem>>, %arg4: memref<1x128xf32, #tpu.memory_space<vmem>>, %arg5: memref<1024x128xbf16, #tpu.memory_space<vmem>>) attributes {dimension_semantics = [#tpu.dimension_semantics<parallel>], iteration_bounds = array<i64: 2>, scalar_prefetch = 0 : i64, scratch_operands = 0 : i64, tpu.core_type = #tpu.core_type<tc>, window_params = [{transform_indices = @transform_0, window_bounds = array<i64: 1024, 27>}, {pipeline_mode = #tpu.pipeline_mode<synchronous>, transform_indices = @transform_1, window_bounds = array<i64: 27, 128>}, {pipeline_mode = #tpu.pipeline_mode<synchronous>, transform_indices = @transform_2, window_bounds = array<i64: 1, 128>}, {pipeline_mode = #tpu.pipeline_mode<synchronous>, transform_indices = @transform_3, window_bounds = array<i64: 1, 128>}, {transform_indices = @transform_4, window_bounds = array<i64: 1024, 128>}]} {
    %c0 = arith.constant 0 : index
    %c0_0 = arith.constant 0 : index
    %0 = vector.load %arg1[%c0, %c0_0] : memref<1024x27xbf16, #tpu.memory_space<vmem>>, vector<1024x27xbf16>
    %c0_1 = arith.constant 0 : index
    %c0_2 = arith.constant 0 : index
    %1 = vector.load %arg2[%c0_1, %c0_2] : memref<27x128xbf16, #tpu.memory_space<vmem>>, vector<27x128xbf16>
    %cst = arith.constant dense<0.000000e+00> : vector<1024x128xf32>
    %2 = tpu.matmul %0, %1, %cst {dimension_numbers = #tpu.dot_dimension_numbers<[1], [0], [0], [1], [0, 0, 1, 1], [], []>} : vector<1024x27xbf16>, vector<27x128xbf16>, vector<1024x128xf32> -> vector<1024x128xf32>
    %c0_3 = arith.constant 0 : index
    %c0_4 = arith.constant 0 : index
    %3 = vector.load %arg3[%c0_3, %c0_4] : memref<1x128xf32, #tpu.memory_space<vmem>>, vector<1x128xf32>
    %4 = vector.broadcast %3 : vector<1x128xf32> to vector<1024x128xf32>
    %5 = arith.mulf %2, %4 : vector<1024x128xf32>
    %c0_5 = arith.constant 0 : index
    %c0_6 = arith.constant 0 : index
    %6 = vector.load %arg4[%c0_5, %c0_6] : memref<1x128xf32, #tpu.memory_space<vmem>>, vector<1x128xf32>
    %7 = vector.broadcast %6 : vector<1x128xf32> to vector<1024x128xf32>
    %8 = arith.addf %5, %7 : vector<1024x128xf32>
    %cst_7 = arith.constant 0.000000e+00 : f32
    %9 = vector.broadcast %cst_7 : f32 to vector<1024x128xf32>
    %10 = arith.maximumf %8, %9 : vector<1024x128xf32>
    %11 = arith.truncf %10 : vector<1024x128xf32> to vector<1024x128xbf16>
    %c0_8 = arith.constant 0 : index
    %c0_9 = arith.constant 0 : index
    %12 = vector.load %arg5[%c0_8, %c0_9] : memref<1024x128xbf16, #tpu.memory_space<vmem>>, vector<1024x128xbf16>
    tpu.vector_store %arg5[%c0_8, %c0_9], %11 {strides = array<i32>} : memref<1024x128xbf16, #tpu.memory_space<vmem>>, vector<1024x128xbf16>,
    return
  }
  func.func @transform_0(%arg0: i32) -> (i32, i32) {
    %c0_i32 = arith.constant 0 : i32
    %c0_i32_0 = arith.constant 0 : i32
    return %arg0, %c0_i32 : i32, i32
  }
  func.func @transform_1(%arg0: i32) -> (i32, i32) {
    %c0_i32 = arith.constant 0 : i32
    %c0_i32_0 = arith.constant 0 : i32
    %c0_i32_1 = arith.constant 0 : i32
    return %c0_i32, %c0_i32_0 : i32, i32
  }
  func.func @transform_2(%arg0: i32) -> (i32, i32) {
    %c0_i32 = arith.constant 0 : i32
    %c0_i32_0 = arith.constant 0 : i32
    %c0_i32_1 = arith.constant 0 : i32
    return %c0_i32, %c0_i32_0 : i32, i32
  }
  func.func @transform_3(%arg0: i32) -> (i32, i32) {
    %c0_i32 = arith.constant 0 : i32
    %c0_i32_0 = arith.constant 0 : i32
    %c0_i32_1 = arith.constant 0 : i32
    return %c0_i32, %c0_i32_0 : i32, i32
  }
  func.func @transform_4(%arg0: i32) -> (i32, i32) {
    %c0_i32 = arith.constant 0 : i32
    %c0_i32_0 = arith.constant 0 : i32
    return %arg0, %c0_i32 : i32, i32
  }
}

</mosaic_0001>

<bundles_post_ra>
// kernel: tpu_custom_call.1
= control target key start
LH: loop header
LB: loop body
LE: loop exit
PB: predicated region body
PF: predicated region fallthrough
CT: control target
= control target key end

     0   :  { %9 = vsyncpa [#allocation3], 0  ;;  %s4296_s0 = inlined_call_operand.vmem [shape: bf16[2048,27], index: 0, kind: input, shape index: {}]   ;;  %s4297_s1 = inlined_call_operand.vmem [shape: bf16[27,128], index: 1, kind: input, shape index: {}]   ;;  %s4298_s2 = inlined_call_operand.vmem [shape: f32[1,128], index: 2, kind: input, shape index: {}]   ;;  %s4299_s3 = inlined_call_operand.vmem [shape: f32[1,128], index: 3, kind: input, shape index: {}]   ;;  %s4300_s4 = inlined_call_operand.hbm [shape: bf16[2048,128], index: 4, kind: output, shape index: {}]  }
   0x1   :  { %11 = vsyncpa [#allocation3 + $0x1], 0  ;;  %s3711_s15 = smov 0   ;;  %s3713_s16 = smov 0  }
   0x2   :  { %s3715_s17 = smov 0   ;;  %s3717_s18 = smov 0  }
   0x3 LB: > { %s3732_s19 = sadd.s32 4294967295, %s3680_s18   ;;  %s2522_s20 = sadd.s32 4294967294, %s3680_s18   ;;  %s3680_s18 = sphi %s3717_s18, %s4306_s18   ;;  %s3676_s17 = sphi %s3715_s17, %s4305_s17   ;;  %s3672_s16 = sphi %s3713_s16, %s4304_s16   ;;  %s3668_s15 = sphi %s3711_s15, %s4303_s15  }
   0x4   : > { %s3736_s21 = sadd.s32 1, %s3680_s18   ;;  %s113_s22 = sadd.s32 1, %s3676_s17 }
   0x5   : > { %s110_s23 = ssub.s32 %s3680_s18, %s3736_s21  ;;  %p123_p0 = scmp.ne.s32.totalorder %s3676_s17, %s3672_s16 }
   0x6   : > { %p111_p1 = scmp.eq.s32.totalorder %s110_s23, 0  ;;  %p124_p2 = scmp.eq.s32.totalorder %s3732_s19, 1 }
   0x7   : > { %p129_p3 = scmp.ne.s32.totalorder %s3672_s16, %s3668_s15  ;;  %p130_p4 = scmp.eq.s32.totalorder %s2522_s20, 1 }
   0x8   : > { %s3747_s24 = scalar_select %p111_p1, %s3676_s17, %s113_s22  }
   0x9   : > { %p3749_p5 = por %p124_p2, %p123_p0  ;;  %p3753_p6 = por %p130_p4, %p129_p3 }
   0xa   : > { %p2525_p7 = scmp.ge.s32.totalorder %s3680_s18, 1  ;;  %p166_p8 = scmp.lt.s32.totalorder %s3680_s18, 3 }
   0xc   : > { %p167_p9 = pnand %p2525_p7, %p166_p8 }
   0xd   : > { %v3550_v0 = vld [vmem:[%s4297_s1] sm:$0xff] (!%p167_p9)   ;;  %vm856_vm0 = vcmask (!%p167_p9), 1044480   ;;  %v3551_v1 = vld [vmem:[%s4297_s1 + $0x8] sm:$0x3f] (!%p167_p9)   ;;  %vm857_vm1 = vcmask (!%p167_p9), 1045504   ;;  %s2527_s5 = sshll.u32 (!%p167_p9), %s3732_s19, 7 }
   0xe   : > { %170 = sbr.rel (%p167_p9) target bundleno = 386 (0x182), region = 36  ;;  %3372 = vmatprep.subr.bf16.mxu0 (!%p167_p9), %v3550_v0  ;;  %3504 = vmatprep.subr.bf16.mxu1 (!%p167_p9), %v3550_v0  ;;  %v3682_v2 = vmov (!%p167_p9), 65535   ;;  %p193_p10 = scmp.lt.s32.totalorder (!%p167_p9), %s2527_s5, 255  ;;  %vm663_vm2 = vcmask (!%p167_p9), 220160  }
   0xf   : > { %3373 = vmatpush3.bf16.msra.mxu0 (!%p167_p9), %v3550_v0  ;;  %3506 = vmatpush3.bf16.msra.mxu1 (!%p167_p9), %v3550_v0  ;;  %v858_v3 = vsel (!%p167_p9), %vm856_vm0, 4294967295, %v3682_v2  ;;  %s189_s14 = sand.u32 (!%p167_p9), 1, %s3672_s16   ;;  %s2922_s30 = sshll.u32 (!%p167_p9), %s3732_s19, 13 }
  0x10   : > { %v859_v4 = vsel (!%p167_p9), %vm857_vm1, %v858_v3, 0  ;;  %s2526_s20 = sshll.u32 (!%p167_p9), %s189_s14, 9  ;;  %s4245_s8 = scalar_lea.hbm (!%p167_p9), %s4300_s4, %s2922_s30 }
  0x11   : > { %v861_v5 = vand.u32 (!%p167_p9), %v3551_v1, %v859_v4  ;;  %s3931_s22 = scalar_lea.vmem (!%p167_p9), [#allocation2], %s2526_s20  ;;  %s4255_s19 = scalar_lea.sflag (!%p167_p9), [#allocation3], %s189_s14 }
  0x12   : > { %s3683_s10 = smov (!%p167_p9), [#allocation2]  }
  0x13   : > { %3374 = vmatprep.subr.bf16.mxu0 (!%p167_p9), %v861_v5  ;;  %3505 = vmatprep.subr.bf16.mxu1 (!%p167_p9), %v861_v5  ;;  %s3622_s11 = sshll.u32 (!%p167_p9), %s3683_s10, 4  ;;  %s3623_s11 = int_to_ptr.vmem [resolvable:$false] %s3622_s11 }
  0x14   : > { %3375 = vmatpush3.bf16.msra.mxu0 (!%p167_p9), %v861_v5  ;;  %3507 = vmatpush3.bf16.msra.mxu1 (!%p167_p9), %v861_v5  ;;  %s3624_s12 = scalar_lea.vmem (!%p167_p9), %s3623_s11, 16384 }
  0x15   : > { %s4308_s5 = smov (!%p193_p10, %s2527_s5), 255 }
  0x16   : > { %s2528_s6 = sshll.u32 %s4308_s5, 2  ;;  %s2460_s5 = sshll.u32 %s3931_s22, 4  ;;  %s4247_s5 = int_to_ptr.vmem [resolvable:$true] %s2460_s5 }
  0x17   : > { %s3769_s9 = scalar_lea.vmem %s4296_s0, %s2528_s6  ;;  %p3625_p0 = scmp.lt.s32.totalorder %s4247_s5, %s3623_s11 }
  0x18   : > { %v3552_v6 = vld [vmem:[%s3769_s9] sm:$0xff]   ;;  %v3554_v8 = vld [vmem:[%s3769_s9 + $0x8] sm:$0xff]   ;;  %v3556_v10 = vld [vmem:[%s3769_s9 + $0x10] sm:$0xff]  }
  0x19   : > { %v3553_v7 = vld [vmem:[%s3769_s9 + $0x100] sm:$0xff]   ;;  %3376 = vmatprep.mubr.msk.bf16.mxu0 %vm663_vm2, %v3552_v6  ;;  %v3555_v9 = vld [vmem:[%s3769_s9 + $0x108] sm:$0xff]   ;;  %v3557_v11 = vld [vmem:[%s3769_s9 + $0x110] sm:$0xff]  }
  0x1a   : > { %3440 = vmatprep.mubr.msk.bf16.mxu1 %vm663_vm2, %v3553_v7  ;;  %3377 = vmatmul.mubr.msk.bf16.vlgmr.msra.gmra.mrb[0].mxu0 %vm663_vm2, %v3554_v8  ;;  %v3558_v12 = vld [vmem:[%s3769_s9 + $0x18] sm:$0xff]   ;;  %v3560_v14 = vld [vmem:[%s3769_s9 + $0x20] sm:$0xff]   ;;  %v3562_v16 = vld [vmem:[%s3769_s9 + $0x28] sm:$0xff]  }
  0x1b   : > { %3441 = vmatmul.mubr.msk.bf16.vlgmr.msra.gmra.mrb[0].mxu1 %vm663_vm2, %v3555_v9  ;;  %3380 = vmatprep.mubr.msk.bf16.mxu0 %vm663_vm2, %v3556_v10  ;;  %v3559_v13 = vld [vmem:[%s3769_s9 + $0x118] sm:$0xff]   ;;  %v3561_v15 = vld [vmem:[%s3769_s9 + $0x120] sm:$0xff]   ;;  %v3563_v17 = vld [vmem:[%s3769_s9 + $0x128] sm:$0xff]  }
  0x1c   : > { %3444 = vmatprep.mubr.msk.bf16.mxu1 %vm663_vm2, %v3557_v11  ;;  %v3564_v18 = vld [vmem:[%s3769_s9 + $0x30] sm:$0xff]   ;;  %v3566_v20 = vld [vmem:[%s3769_s9 + $0x38] sm:$0xff]   ;;  %v3568_v22 = vld [vmem:[%s3769_s9 + $0x40] sm:$0xff]  }
  0x1d   : > { %v3565_v19 = vld [vmem:[%s3769_s9 + $0x130] sm:$0xff]   ;;  %v3567_v21 = vld [vmem:[%s3769_s9 + $0x138] sm:$0xff]   ;;  %v3569_v23 = vld [vmem:[%s3769_s9 + $0x140] sm:$0xff]  }
  0x1e   : > { %v3570_v24 = vld [vmem:[%s3769_s9 + $0x48] sm:$0xff]   ;;  %v3572_v26 = vld [vmem:[%s3769_s9 + $0x50] sm:$0xff]   ;;  %v3574_v28 = vld [vmem:[%s3769_s9 + $0x58] sm:$0xff]  }
  0x1f   : > { %v3571_v25 = vld [vmem:[%s3769_s9 + $0x148] sm:$0xff]   ;;  %v3573_v27 = vld [vmem:[%s3769_s9 + $0x150] sm:$0xff]   ;;  %v3575_v29 = vld [vmem:[%s3769_s9 + $0x158] sm:$0xff]  }
  0x20   : > { %v3576_v30 = vld [vmem:[%s3769_s9 + $0x60] sm:$0xff]   ;;  %v3578_v32 = vld [vmem:[%s3769_s9 + $0x68] sm:$0xff]   ;;  %v3580_v34 = vld [vmem:[%s3769_s9 + $0x70] sm:$0xff]  }
  0x21   : > { %v3577_v31 = vld [vmem:[%s3769_s9 + $0x160] sm:$0xff]   ;;  %v3579_v33 = vld [vmem:[%s3769_s9 + $0x168] sm:$0xff]   ;;  %v3581_v35 = vld [vmem:[%s3769_s9 + $0x170] sm:$0xff]  }
  0x22   : > { %3381 = vmatmul.mubr.msk.bf16.gmra.mrb[4].mxu0 %vm663_vm2, %v3558_v12  ;;  %v3582_v36 = vld [vmem:[%s3769_s9 + $0x78] sm:$0xff]   ;;  %v3584_v38 = vld [vmem:[%s3769_s9 + $0x80] sm:$0xff]   ;;  %v3586_v40 = vld [vmem:[%s3769_s9 + $0x88] sm:$0xff]  }
  0x23   : > { %3445 = vmatmul.mubr.msk.bf16.gmra.mrb[4].mxu1 %vm663_vm2, %v3559_v13  ;;  %3384 = vmatprep.mubr.msk.bf16.mxu0 %vm663_vm2, %v3560_v14  ;;  %v3583_v37 = vld [vmem:[%s3769_s9 + $0x178] sm:$0xff]   ;;  %v3585_v39 = vld [vmem:[%s3769_s9 + $0x180] sm:$0xff]   ;;  %v3587_v41 = vld [vmem:[%s3769_s9 + $0x188] sm:$0xff]  }
  0x24   : > { %3448 = vmatprep.mubr.msk.bf16.mxu1 %vm663_vm2, %v3561_v15  ;;  %v3588_v42 = vld [vmem:[%s3769_s9 + $0x90] sm:$0xff]   ;;  %v3590_v44 = vld [vmem:[%s3769_s9 + $0x98] sm:$0xff]   ;;  %v3592_v46 = vld [vmem:[%s3769_s9 + $0xa0] sm:$0xff]  }
  0x25   : > { %v3589_v43 = vld [vmem:[%s3769_s9 + $0x190] sm:$0xff]   ;;  %v3591_v45 = vld [vmem:[%s3769_s9 + $0x198] sm:$0xff]   ;;  %v3593_v47 = vld [vmem:[%s3769_s9 + $0x1a0] sm:$0xff]  }
  0x26   : > { %v3594_v48 = vld [vmem:[%s3769_s9 + $0xa8] sm:$0xff]   ;;  %v3596_v50 = vld [vmem:[%s3769_s9 + $0xb0] sm:$0xff]   ;;  %v3598_v52 = vld [vmem:[%s3769_s9 + $0xb8] sm:$0xff]  }
  0x27   : > { %v3595_v49 = vld [vmem:[%s3769_s9 + $0x1a8] sm:$0xff]   ;;  %v3597_v51 = vld [vmem:[%s3769_s9 + $0x1b0] sm:$0xff]   ;;  %v3599_v53 = vld [vmem:[%s3769_s9 + $0x1b8] sm:$0xff]  }
  0x28   : > { %v3600_v54 = vld [vmem:[%s3769_s9 + $0xc0] sm:$0xff]   ;;  %v3602_v56 = vld [vmem:[%s3769_s9 + $0xc8] sm:$0xff]   ;;  %v3604_v58 = vld [vmem:[%s3769_s9 + $0xd0] sm:$0xff]  }
  0x29   : > { %v3601_v55 = vld [vmem:[%s3769_s9 + $0x1c0] sm:$0xff]   ;;  %v3603_v57 = vld [vmem:[%s3769_s9 + $0x1c8] sm:$0xff]   ;;  %v3605_v59 = vld [vmem:[%s3769_s9 + $0x1d0] sm:$0xff]  }
  0x2a   : > { %3385 = vmatmul.mubr.msk.bf16.gmra.mrb[8].mxu0 %vm663_vm2, %v3562_v16  ;;  %v3606_v60 = vld [vmem:[%s3769_s9 + $0xd8] sm:$0xff]   ;;  %v3608_v62 = vld [vmem:[%s3769_s9 + $0xe0] sm:$0xff]   ;;  %v3610_v0 = vld [vmem:[%s3769_s9 + $0xe8] sm:$0xff]  }
  0x2b   : > { %3449 = vmatmul.mubr.msk.bf16.gmra.mrb[8].mxu1 %vm663_vm2, %v3563_v17  ;;  %3388 = vmatprep.mubr.msk.bf16.mxu0 %vm663_vm2, %v3564_v18  ;;  %v3607_v61 = vld [vmem:[%s3769_s9 + $0x1d8] sm:$0xff]   ;;  %v3609_v63 = vld [vmem:[%s3769_s9 + $0x1e0] sm:$0xff]   ;;  %v3611_v1 = vld [vmem:[%s3769_s9 + $0x1e8] sm:$0xff]  }
  0x2c   : > { %3452 = vmatprep.mubr.msk.bf16.mxu1 %vm663_vm2, %v3565_v19  ;;  %v3612_v2 = vld [vmem:[%s3769_s9 + $0xf0] sm:$0xff]   ;;  %v3614_v4 = vld [vmem:[%s3769_s9 + $0xf8] sm:$0xff]   ;;  %v3902_v6 = vld [vmem:[%s4298_s2] ss:$0 sm:$0xff] }
  0x2d   : > { %v3613_v3 = vld [vmem:[%s3769_s9 + $0x1f0] sm:$0xff]   ;;  %v3615_v5 = vld [vmem:[%s3769_s9 + $0x1f8] sm:$0xff]   ;;  %v3907_v8 = vld [vmem:[%s4299_s3] ss:$0 sm:$0xff]  ;;  %s3618_s9 = scalar_lea.vmem %s4247_s5, 8192 }
  0x2e   : > { %p3619_p11 = scmp.ne.s32.totalorder %s4247_s5, %s3618_s9  ;;  %p3626_p1 = scmp.lt.s32.totalorder %s3624_s12, %s3618_s9 }
  0x30   : > { %p3620_p12 = pnand %p3619_p11, %p3749_p5  ;;  %p3627_p2 = por %p3626_p1, %p3625_p0 }
  0x32   : > { %3389 = vmatmul.mubr.msk.bf16.gmra.mrb[12].mxu0 %vm663_vm2, %v3566_v20  ;;  %p3621_p13 = pneg %p3620_p12 }
  0x33   : > { %3453 = vmatmul.mubr.msk.bf16.gmra.mrb[12].mxu1 %vm663_vm2, %v3567_v21  ;;  %3392 = vmatprep.mubr.msk.bf16.mxu0 %vm663_vm2, %v3568_v22 }
  0x34   : > { %3456 = vmatprep.mubr.msk.bf16.mxu1 %vm663_vm2, %v3569_v23  ;;  %p3628_p3 = pnand %p3627_p2, %p3621_p13 }
  0x3a   : > { %3393 = vmatmul.mubr.msk.bf16.gmra.mrb[16].mxu0 %vm663_vm2, %v3570_v24 }
  0x3b   : > { %3457 = vmatmul.mubr.msk.bf16.gmra.mrb[16].mxu1 %vm663_vm2, %v3571_v25  ;;  %3396 = vmatprep.mubr.msk.bf16.mxu0 %vm663_vm2, %v3572_v26 }
  0x3c   : > { %3460 = vmatprep.mubr.msk.bf16.mxu1 %vm663_vm2, %v3573_v27 }
  0x42   : > { %3397 = vmatmul.mubr.msk.bf16.gmra.mrb[20].mxu0 %vm663_vm2, %v3574_v28 }
  0x43   : > { %3461 = vmatmul.mubr.msk.bf16.gmra.mrb[20].mxu1 %vm663_vm2, %v3575_v29  ;;  %3400 = vmatprep.mubr.msk.bf16.mxu0 %vm663_vm2, %v3576_v30 }
  0x44   : > { %3464 = vmatprep.mubr.msk.bf16.mxu1 %vm663_vm2, %v3577_v31 }
  0x4a   : > { %3401 = vmatmul.mubr.msk.bf16.gmra.mrb[24].mxu0 %vm663_vm2, %v3578_v32 }
  0x4b   : > { %3465 = vmatmul.mubr.msk.bf16.gmra.mrb[24].mxu1 %vm663_vm2, %v3579_v33  ;;  %3404 = vmatprep.mubr.msk.bf16.mxu0 %vm663_vm2, %v3580_v34 }
  0x4c   : > { %3468 = vmatprep.mubr.msk.bf16.mxu1 %vm663_vm2, %v3581_v35 }
  0x52   : > { %3405 = vmatmul.mubr.msk.bf16.gmra.mrb[28].mxu0 %vm663_vm2, %v3582_v36 }
  0x53   : > { %3469 = vmatmul.mubr.msk.bf16.gmra.mrb[28].mxu1 %vm663_vm2, %v3583_v37  ;;  %3408 = vmatprep.mubr.msk.bf16.mxu0 %vm663_vm2, %v3584_v38 }
  0x54   : > { %3472 = vmatprep.mubr.msk.bf16.mxu1 %vm663_vm2, %v3585_v39 }
  0x5a   : > { %3409 = vmatmul.mubr.msk.bf16.gmra.mrb[32].mxu0 %vm663_vm2, %v3586_v40 }
  0x5b   : > { %3473 = vmatmul.mubr.msk.bf16.gmra.mrb[32].mxu1 %vm663_vm2, %v3587_v41  ;;  %3412 = vmatprep.mubr.msk.bf16.mxu0 %vm663_vm2, %v3588_v42 }
  0x5c   : > { %3476 = vmatprep.mubr.msk.bf16.mxu1 %vm663_vm2, %v3589_v43 }
  0x62   : > { %3413 = vmatmul.mubr.msk.bf16.gmra.mrb[36].mxu0 %vm663_vm2, %v3590_v44 }
  0x63   : > { %3477 = vmatmul.mubr.msk.bf16.gmra.mrb[36].mxu1 %vm663_vm2, %v3591_v45  ;;  %3416 = vmatprep.mubr.msk.bf16.mxu0 %vm663_vm2, %v3592_v46 }
  0x64   : > { %3480 = vmatprep.mubr.msk.bf16.mxu1 %vm663_vm2, %v3593_v47 }
  0x6a   : > { %3417 = vmatmul.mubr.msk.bf16.gmra.mrb[40].mxu0 %vm663_vm2, %v3594_v48 }
  0x6b   : > { %3481 = vmatmul.mubr.msk.bf16.gmra.mrb[40].mxu1 %vm663_vm2, %v3595_v49  ;;  %3420 = vmatprep.mubr.msk.bf16.mxu0 %vm663_vm2, %v3596_v50 }
  0x6c   : > { %3484 = vmatprep.mubr.msk.bf16.mxu1 %vm663_vm2, %v3597_v51 }
  0x72   : > { %3421 = vmatmul.mubr.msk.bf16.gmra.mrb[44].mxu0 %vm663_vm2, %v3598_v52 }
  0x73   : > { %3485 = vmatmul.mubr.msk.bf16.gmra.mrb[44].mxu1 %vm663_vm2, %v3599_v53  ;;  %3424 = vmatprep.mubr.msk.bf16.mxu0 %vm663_vm2, %v3600_v54 }
  0x74   : > { %3488 = vmatprep.mubr.msk.bf16.mxu1 %vm663_vm2, %v3601_v55 }
  0x7a   : > { %3425 = vmatmul.mubr.msk.bf16.gmra.mrb[48].mxu0 %vm663_vm2, %v3602_v56 }
  0x7b   : > { %3489 = vmatmul.mubr.msk.bf16.gmra.mrb[48].mxu1 %vm663_vm2, %v3603_v57  ;;  %3428 = vmatprep.mubr.msk.bf16.mxu0 %vm663_vm2, %v3604_v58 }
  0x7c   : > { %3492 = vmatprep.mubr.msk.bf16.mxu1 %vm663_vm2, %v3605_v59 }
  0x82   : > { %3429 = vmatmul.mubr.msk.bf16.gmra.mrb[52].mxu0 %vm663_vm2, %v3606_v60 }
  0x83   : > { %3493 = vmatmul.mubr.msk.bf16.gmra.mrb[52].mxu1 %vm663_vm2, %v3607_v61  ;;  %3432 = vmatprep.mubr.msk.bf16.mxu0 %vm663_vm2, %v3608_v62 }
  0x84   : > { %3496 = vmatprep.mubr.msk.bf16.mxu1 %vm663_vm2, %v3609_v63 }
  0x8a   : > { %3433 = vmatmul.mubr.msk.bf16.gmra.mrb[56].mxu0 %vm663_vm2, %v3610_v0 }
  0x8b   : > { %3497 = vmatmul.mubr.msk.bf16.gmra.mrb[56].mxu1 %vm663_vm2, %v3611_v1  ;;  %3436 = vmatprep.mubr.msk.bf16.mxu0 %vm663_vm2, %v3612_v2 }
  0x8c   : > { %3500 = vmatprep.mubr.msk.bf16.mxu1 %vm663_vm2, %v3613_v3 }
  0x92   : > { %3437 = vmatmul.mubr.msk.bf16.gmra.mrb[60].mxu0 %vm663_vm2, %v3614_v4 }
  0x93   : > { %3501 = vmatmul.mubr.msk.bf16.gmra.mrb[60].mxu1 %vm663_vm2, %v3615_v5 }
  0xed   : > { %v3378_v7 = vpop.f32.mrb[0].mxu0 }
  0xee   : > { %v1417_v9 = vmul.f32 %v3378_v7, %v3902_v6  ;;  %v3442_v10 = vpop.f32.mrb[0].mxu1  ;;  %v897_v11 = vpop.f32.mrb[1].mxu0 }
  0xef   : > { %v1481_v12 = vmul.f32 %v3442_v10, %v3902_v6  ;;  %v1415_v13 = vmul.f32 %v3902_v6, %v897_v11  ;;  %v1153_v14 = vpop.f32.mrb[1].mxu1  ;;  %v3379_v15 = vpop.f32.mrb[2].mxu0 }
  0xf0   : > { %v1552_v16 = vadd.f32 %v3907_v8, %v1417_v9  ;;  %v1479_v17 = vmul.f32 %v3902_v6, %v1153_v14  ;;  %v1418_v18 = vmul.f32 %v3379_v15, %v3902_v6  ;;  %v3443_v19 = vpop.f32.mrb[2].mxu1  ;;  %v900_v20 = vpop.f32.mrb[3].mxu0 }
  0xf1   : > { %v1616_v21 = vadd.f32 %v3907_v8, %v1481_v12  ;;  %v1550_v22 = vadd.f32 %v3907_v8, %v1415_v13  ;;  %v1482_v23 = vmul.f32 %v3443_v19, %v3902_v6  ;;  %v1416_v24 = vmul.f32 %v3902_v6, %v900_v20  ;;  %v1156_v25 = vpop.f32.mrb[3].mxu1 }
  0xf2   : > { %v1614_v26 = vadd.f32 %v3907_v8, %v1479_v17  ;;  %v1553_v27 = vadd.f32 %v3907_v8, %v1418_v18  ;;  %v1480_v28 = vmul.f32 %v3902_v6, %v1156_v25  ;;  %v1680_v31 = vmax.f32 %v1552_v16, 0.0 }
  0xf3   : > { %v1617_v29 = vadd.f32 %v3907_v8, %v1482_v23  ;;  %v1551_v30 = vadd.f32 %v3907_v8, %v1416_v24  ;;  %v1744_v34 = vmax.f32 %v1616_v21, 0.0  ;;  %v1678_v35 = vmax.f32 %v1550_v22, 0.0 }
  0xf4   : > { %v1681_v32 = vmax.f32 %v1553_v27, 0.0  ;;  %v1615_v33 = vadd.f32 %v3907_v8, %v1480_v28  ;;  %v1742_v39 = vmax.f32 %v1614_v26, 0.0 }
  0xf5   : > { %v1745_v36 = vmax.f32 %v1617_v29, 0.0  ;;  %v1679_v37 = vmax.f32 %v1551_v30, 0.0  ;;  %v3382_v38 = vpop.f32.mrb[4].mxu0 }
  0xf6   : > { %v2931_v40 = vpack.c.bf16 %v1681_v32, %v1680_v31  ;;  %v1743_v41 = vmax.f32 %v1615_v33, 0.0  ;;  %v1421_v42 = vmul.f32 %v3382_v38, %v3902_v6  ;;  %v3446_v43 = vpop.f32.mrb[4].mxu1  ;;  %v913_v44 = vpop.f32.mrb[5].mxu0 }
  0xf7   : > { %v3091_v45 = vpack.c.bf16 %v1745_v36, %v1744_v34  ;;  %v2926_v46 = vpack.c.bf16 %v1679_v37, %v1678_v35  ;;  %v1485_v47 = vmul.f32 %v3446_v43, %v3902_v6  ;;  %v1419_v48 = vmul.f32 %v3902_v6, %v913_v44  ;;  %v1169_v49 = vpop.f32.mrb[5].mxu1  ;;  %v3383_v50 = vpop.f32.mrb[6].mxu0 }
  0xf8   : > { %3243 = vst [vmem:[%s3931_s22 + $0x8] sm:$0xff] %v2931_v40   ;;  %v3086_v51 = vpack.c.bf16 %v1743_v41, %v1742_v39  ;;  %v1556_v52 = vadd.f32 %v3907_v8, %v1421_v42  ;;  %v1483_v53 = vmul.f32 %v3902_v6, %v1169_v49  ;;  %v1422_v54 = vmul.f32 %v3383_v50, %v3902_v6  ;;  %v3447_v55 = vpop.f32.mrb[6].mxu1  ;;  %v916_v56 = vpop.f32.mrb[7].mxu0 }
  0xf9   : > { %3275 = vst [vmem:[%s3931_s22 + $0x108] sm:$0xff] %v3091_v45   ;;  %2927 = vst [vmem:[%s3931_s22] sm:$0xff] %v2926_v46   ;;  %v1620_v57 = vadd.f32 %v3907_v8, %v1485_v47  ;;  %v1554_v58 = vadd.f32 %v3907_v8, %v1419_v48  ;;  %v1486_v59 = vmul.f32 %v3447_v55, %v3902_v6  ;;  %v1172_v61 = vpop.f32.mrb[7].mxu1 }
  0xfa   : > { %v1420_v60 = vmul.f32 %v3902_v6, %v916_v56  ;;  %3274 = vst [vmem:[%s3931_s22 + $0x100] sm:$0xff] %v3086_v51   ;;  %v1618_v62 = vadd.f32 %v3907_v8, %v1483_v53  ;;  %v1557_v63 = vadd.f32 %v3907_v8, %v1422_v54  ;;  %v1484_v0 = vmul.f32 %v3902_v6, %v1172_v61 }
  0xfb   : > { %v1621_v1 = vadd.f32 %v3907_v8, %v1486_v59  ;;  %v1684_v3 = vmax.f32 %v1556_v52, 0.0  ;;  %v1748_v7 = vmax.f32 %v1620_v57, 0.0  ;;  %v1682_v9 = vmax.f32 %v1554_v58, 0.0 }
  0xfc   : > { %v1555_v2 = vadd.f32 %v3907_v8, %v1420_v60  ;;  %v1685_v4 = vmax.f32 %v1557_v63, 0.0  ;;  %v1619_v5 = vadd.f32 %v3907_v8, %v1484_v0  ;;  %v1746_v13 = vmax.f32 %v1618_v62, 0.0 }
  0xfd   : > { %v1749_v10 = vmax.f32 %v1621_v1, 0.0  ;;  %v3386_v12 = vpop.f32.mrb[8].mxu0 }
  0xfe   : > { %v1683_v11 = vmax.f32 %v1555_v2, 0.0  ;;  %v2941_v14 = vpack.c.bf16 %v1685_v4, %v1684_v3  ;;  %v1747_v15 = vmax.f32 %v1619_v5, 0.0  ;;  %v1425_v16 = vmul.f32 %v3386_v12, %v3902_v6  ;;  %v3450_v17 = vpop.f32.mrb[8].mxu1  ;;  %v929_v18 = vpop.f32.mrb[9].mxu0 }
  0xff   : > { %v3101_v19 = vpack.c.bf16 %v1749_v10, %v1748_v7  ;;  %v1489_v21 = vmul.f32 %v3450_v17, %v3902_v6  ;;  %v1423_v22 = vmul.f32 %v3902_v6, %v929_v18  ;;  %v1185_v23 = vpop.f32.mrb[9].mxu1  ;;  %v3387_v24 = vpop.f32.mrb[10].mxu0 }
 0x100   : > { %v2936_v20 = vpack.c.bf16 %v1683_v11, %v1682_v9  ;;  %3245 = vst [vmem:[%s3931_s22 + $0x18] sm:$0xff] %v2941_v14   ;;  %v3096_v25 = vpack.c.bf16 %v1747_v15, %v1746_v13  ;;  %v1560_v26 = vadd.f32 %v3907_v8, %v1425_v16  ;;  %v1487_v27 = vmul.f32 %v3902_v6, %v1185_v23  ;;  %v3451_v29 = vpop.f32.mrb[10].mxu1  ;;  %v932_v30 = vpop.f32.mrb[11].mxu0 }
 0x101   : > { %v1426_v28 = vmul.f32 %v3387_v24, %v3902_v6  ;;  %3277 = vst [vmem:[%s3931_s22 + $0x118] sm:$0xff] %v3101_v19   ;;  %v1624_v31 = vadd.f32 %v3907_v8, %v1489_v21  ;;  %v1558_v32 = vadd.f32 %v3907_v8, %v1423_v22  ;;  %v1490_v33 = vmul.f32 %v3451_v29, %v3902_v6  ;;  %v1188_v35 = vpop.f32.mrb[11].mxu1 }
 0x102   : > { %3244 = vst [vmem:[%s3931_s22 + $0x10] sm:$0xff] %v2936_v20   ;;  %v1424_v34 = vmul.f32 %v3902_v6, %v932_v30  ;;  %3276 = vst [vmem:[%s3931_s22 + $0x110] sm:$0xff] %v3096_v25   ;;  %v1622_v36 = vadd.f32 %v3907_v8, %v1487_v27  ;;  %v1488_v38 = vmul.f32 %v3902_v6, %v1188_v35  ;;  %v1688_v41 = vmax.f32 %v1560_v26, 0.0 }
 0x103   : > { %v1561_v37 = vadd.f32 %v3907_v8, %v1426_v28  ;;  %v1625_v39 = vadd.f32 %v3907_v8, %v1490_v33  ;;  %v1752_v44 = vmax.f32 %v1624_v31, 0.0  ;;  %v1686_v45 = vmax.f32 %v1558_v32, 0.0 }
 0x104   : > { %v1559_v40 = vadd.f32 %v3907_v8, %v1424_v34  ;;  %v1623_v43 = vadd.f32 %v3907_v8, %v1488_v38  ;;  %v1750_v49 = vmax.f32 %v1622_v36, 0.0 }
 0x105   : > { %v1689_v42 = vmax.f32 %v1561_v37, 0.0  ;;  %v1753_v46 = vmax.f32 %v1625_v39, 0.0  ;;  %v3390_v48 = vpop.f32.mrb[12].mxu0 }
 0x106   : > { %v1687_v47 = vmax.f32 %v1559_v40, 0.0  ;;  %v1751_v51 = vmax.f32 %v1623_v43, 0.0  ;;  %v1429_v52 = vmul.f32 %v3390_v48, %v3902_v6  ;;  %v3454_v53 = vpop.f32.mrb[12].mxu1  ;;  %v945_v54 = vpop.f32.mrb[13].mxu0 }
 0x107   : > { %v2951_v50 = vpack.c.bf16 %v1689_v42, %v1688_v41  ;;  %v3111_v55 = vpack.c.bf16 %v1753_v46, %v1752_v44  ;;  %v1493_v57 = vmul.f32 %v3454_v53, %v3902_v6  ;;  %v1427_v58 = vmul.f32 %v3902_v6, %v945_v54  ;;  %v1201_v59 = vpop.f32.mrb[13].mxu1  ;;  %v3391_v60 = vpop.f32.mrb[14].mxu0 }
 0x108   : > { %v2946_v56 = vpack.c.bf16 %v1687_v47, %v1686_v45  ;;  %v3106_v61 = vpack.c.bf16 %v1751_v51, %v1750_v49  ;;  %v1564_v62 = vadd.f32 %v3907_v8, %v1429_v52  ;;  %v1491_v63 = vmul.f32 %v3902_v6, %v1201_v59  ;;  %v3455_v1 = vpop.f32.mrb[14].mxu1  ;;  %v948_v2 = vpop.f32.mrb[15].mxu0 }
 0x109   : > { %3247 = vst [vmem:[%s3931_s22 + $0x28] sm:$0xff] %v2951_v50   ;;  %v1430_v0 = vmul.f32 %v3391_v60, %v3902_v6  ;;  %3279 = vst [vmem:[%s3931_s22 + $0x128] sm:$0xff] %v3111_v55   ;;  %v1628_v3 = vadd.f32 %v3907_v8, %v1493_v57  ;;  %v1562_v4 = vadd.f32 %v3907_v8, %v1427_v58  ;;  %v1204_v9 = vpop.f32.mrb[15].mxu1 }
 0x10a   : > { %3246 = vst [vmem:[%s3931_s22 + $0x20] sm:$0xff] %v2946_v56   ;;  %v1494_v5 = vmul.f32 %v3455_v1, %v3902_v6  ;;  %v1428_v7 = vmul.f32 %v3902_v6, %v948_v2  ;;  %3278 = vst [vmem:[%s3931_s22 + $0x120] sm:$0xff] %v3106_v61   ;;  %v1626_v10 = vadd.f32 %v3907_v8, %v1491_v63  ;;  %v1692_v15 = vmax.f32 %v1564_v62, 0.0 }
 0x10b   : > { %v1565_v11 = vadd.f32 %v3907_v8, %v1430_v0  ;;  %v1492_v12 = vmul.f32 %v3902_v6, %v1204_v9  ;;  %v1756_v18 = vmax.f32 %v1628_v3, 0.0  ;;  %v1690_v19 = vmax.f32 %v1562_v4, 0.0 }
 0x10c   : > { %v1629_v13 = vadd.f32 %v3907_v8, %v1494_v5  ;;  %v1563_v14 = vadd.f32 %v3907_v8, %v1428_v7  ;;  %v1754_v23 = vmax.f32 %v1626_v10, 0.0 }
 0x10d   : > { %v1693_v16 = vmax.f32 %v1565_v11, 0.0  ;;  %v1627_v17 = vadd.f32 %v3907_v8, %v1492_v12  ;;  %v3394_v22 = vpop.f32.mrb[16].mxu0 }
 0x10e   : > { %v1757_v20 = vmax.f32 %v1629_v13, 0.0  ;;  %v1691_v21 = vmax.f32 %v1563_v14, 0.0  ;;  %v1433_v26 = vmul.f32 %v3394_v22, %v3902_v6  ;;  %v3458_v27 = vpop.f32.mrb[16].mxu1  ;;  %v961_v28 = vpop.f32.mrb[17].mxu0 }
 0x10f   : > { %v2961_v24 = vpack.c.bf16 %v1693_v16, %v1692_v15  ;;  %v1755_v25 = vmax.f32 %v1627_v17, 0.0  ;;  %v1497_v31 = vmul.f32 %v3458_v27, %v3902_v6  ;;  %v1431_v32 = vmul.f32 %v3902_v6, %v961_v28  ;;  %v1217_v33 = vpop.f32.mrb[17].mxu1  ;;  %v3395_v34 = vpop.f32.mrb[18].mxu0 }
 0x110   : > { %v3121_v29 = vpack.c.bf16 %v1757_v20, %v1756_v18  ;;  %v2956_v30 = vpack.c.bf16 %v1691_v21, %v1690_v19  ;;  %v1568_v36 = vadd.f32 %v3907_v8, %v1433_v26  ;;  %v1495_v37 = vmul.f32 %v3902_v6, %v1217_v33  ;;  %v3459_v39 = vpop.f32.mrb[18].mxu1  ;;  %v964_v40 = vpop.f32.mrb[19].mxu0 }
 0x111   : > { %3249 = vst [vmem:[%s3931_s22 + $0x38] sm:$0xff] %v2961_v24   ;;  %v3116_v35 = vpack.c.bf16 %v1755_v25, %v1754_v23  ;;  %v1434_v38 = vmul.f32 %v3395_v34, %v3902_v6  ;;  %v1632_v41 = vadd.f32 %v3907_v8, %v1497_v31  ;;  %v1566_v42 = vadd.f32 %v3907_v8, %v1431_v32  ;;  %v1220_v45 = vpop.f32.mrb[19].mxu1 }
 0x112   : > { %3281 = vst [vmem:[%s3931_s22 + $0x138] sm:$0xff] %v3121_v29   ;;  %3248 = vst [vmem:[%s3931_s22 + $0x30] sm:$0xff] %v2956_v30   ;;  %v1498_v43 = vmul.f32 %v3459_v39, %v3902_v6  ;;  %v1432_v44 = vmul.f32 %v3902_v6, %v964_v40  ;;  %v1630_v46 = vadd.f32 %v3907_v8, %v1495_v37  ;;  %v1696_v51 = vmax.f32 %v1568_v36, 0.0 }
 0x113   : > { %3280 = vst [vmem:[%s3931_s22 + $0x130] sm:$0xff] %v3116_v35   ;;  %v1569_v47 = vadd.f32 %v3907_v8, %v1434_v38  ;;  %v1496_v48 = vmul.f32 %v3902_v6, %v1220_v45  ;;  %v1760_v54 = vmax.f32 %v1632_v41, 0.0  ;;  %v1694_v55 = vmax.f32 %v1566_v42, 0.0 }
 0x114   : > { %v1633_v49 = vadd.f32 %v3907_v8, %v1498_v43  ;;  %v1567_v50 = vadd.f32 %v3907_v8, %v1432_v44  ;;  %v1758_v59 = vmax.f32 %v1630_v46, 0.0 }
 0x115   : > { %v1697_v52 = vmax.f32 %v1569_v47, 0.0  ;;  %v1631_v53 = vadd.f32 %v3907_v8, %v1496_v48  ;;  %v3398_v58 = vpop.f32.mrb[20].mxu0 }
 0x116   : > { %v1761_v56 = vmax.f32 %v1633_v49, 0.0  ;;  %v1695_v57 = vmax.f32 %v1567_v50, 0.0  ;;  %v1437_v62 = vmul.f32 %v3398_v58, %v3902_v6  ;;  %v3462_v63 = vpop.f32.mrb[20].mxu1  ;;  %v977_v0 = vpop.f32.mrb[21].mxu0 }
 0x117   : > { %v2971_v60 = vpack.c.bf16 %v1697_v52, %v1696_v51  ;;  %v1759_v61 = vmax.f32 %v1631_v53, 0.0  ;;  %v1501_v3 = vmul.f32 %v3462_v63, %v3902_v6  ;;  %v1435_v4 = vmul.f32 %v3902_v6, %v977_v0  ;;  %v1233_v5 = vpop.f32.mrb[21].mxu1  ;;  %v3399_v7 = vpop.f32.mrb[22].mxu0 }
 0x118   : > { %v3131_v1 = vpack.c.bf16 %v1761_v56, %v1760_v54  ;;  %v2966_v2 = vpack.c.bf16 %v1695_v57, %v1694_v55  ;;  %v1572_v10 = vadd.f32 %v3907_v8, %v1437_v62  ;;  %v1499_v11 = vmul.f32 %v3902_v6, %v1233_v5  ;;  %v3463_v13 = vpop.f32.mrb[22].mxu1  ;;  %v980_v14 = vpop.f32.mrb[23].mxu0 }
 0x119   : > { %3251 = vst [vmem:[%s3931_s22 + $0x48] sm:$0xff] %v2971_v60   ;;  %v3126_v9 = vpack.c.bf16 %v1759_v61, %v1758_v59  ;;  %v1438_v12 = vmul.f32 %v3399_v7, %v3902_v6  ;;  %v1636_v15 = vadd.f32 %v3907_v8, %v1501_v3  ;;  %v1570_v16 = vadd.f32 %v3907_v8, %v1435_v4  ;;  %v1236_v19 = vpop.f32.mrb[23].mxu1 }
 0x11a   : > { %3283 = vst [vmem:[%s3931_s22 + $0x148] sm:$0xff] %v3131_v1   ;;  %3250 = vst [vmem:[%s3931_s22 + $0x40] sm:$0xff] %v2966_v2   ;;  %v1502_v17 = vmul.f32 %v3463_v13, %v3902_v6  ;;  %v1436_v18 = vmul.f32 %v3902_v6, %v980_v14  ;;  %v1634_v20 = vadd.f32 %v3907_v8, %v1499_v11  ;;  %v1700_v25 = vmax.f32 %v1572_v10, 0.0 }
 0x11b   : > { %3282 = vst [vmem:[%s3931_s22 + $0x140] sm:$0xff] %v3126_v9   ;;  %v1573_v21 = vadd.f32 %v3907_v8, %v1438_v12  ;;  %v1500_v22 = vmul.f32 %v3902_v6, %v1236_v19  ;;  %v1764_v28 = vmax.f32 %v1636_v15, 0.0  ;;  %v1698_v29 = vmax.f32 %v1570_v16, 0.0 }
 0x11c   : > { %v1637_v23 = vadd.f32 %v3907_v8, %v1502_v17  ;;  %v1571_v24 = vadd.f32 %v3907_v8, %v1436_v18  ;;  %v1762_v33 = vmax.f32 %v1634_v20, 0.0 }
 0x11d   : > { %v1701_v26 = vmax.f32 %v1573_v21, 0.0  ;;  %v1635_v27 = vadd.f32 %v3907_v8, %v1500_v22  ;;  %v3402_v32 = vpop.f32.mrb[24].mxu0 }
 0x11e   : > { %v1765_v30 = vmax.f32 %v1637_v23, 0.0  ;;  %v1699_v31 = vmax.f32 %v1571_v24, 0.0  ;;  %v1441_v36 = vmul.f32 %v3402_v32, %v3902_v6  ;;  %v3466_v37 = vpop.f32.mrb[24].mxu1  ;;  %v993_v38 = vpop.f32.mrb[25].mxu0 }
 0x11f   : > { %v2981_v34 = vpack.c.bf16 %v1701_v26, %v1700_v25  ;;  %v1763_v35 = vmax.f32 %v1635_v27, 0.0  ;;  %v1505_v41 = vmul.f32 %v3466_v37, %v3902_v6  ;;  %v1439_v42 = vmul.f32 %v3902_v6, %v993_v38  ;;  %v1249_v43 = vpop.f32.mrb[25].mxu1  ;;  %v3403_v44 = vpop.f32.mrb[26].mxu0 }
 0x120   : > { %v3141_v39 = vpack.c.bf16 %v1765_v30, %v1764_v28  ;;  %v2976_v40 = vpack.c.bf16 %v1699_v31, %v1698_v29  ;;  %v1576_v46 = vadd.f32 %v3907_v8, %v1441_v36  ;;  %v1503_v47 = vmul.f32 %v3902_v6, %v1249_v43  ;;  %v3467_v49 = vpop.f32.mrb[26].mxu1  ;;  %v996_v50 = vpop.f32.mrb[27].mxu0 }
 0x121   : > { %3253 = vst [vmem:[%s3931_s22 + $0x58] sm:$0xff] %v2981_v34   ;;  %v3136_v45 = vpack.c.bf16 %v1763_v35, %v1762_v33  ;;  %v1442_v48 = vmul.f32 %v3403_v44, %v3902_v6  ;;  %v1640_v51 = vadd.f32 %v3907_v8, %v1505_v41  ;;  %v1574_v52 = vadd.f32 %v3907_v8, %v1439_v42  ;;  %v1252_v55 = vpop.f32.mrb[27].mxu1 }
 0x122   : > { %3285 = vst [vmem:[%s3931_s22 + $0x158] sm:$0xff] %v3141_v39   ;;  %3252 = vst [vmem:[%s3931_s22 + $0x50] sm:$0xff] %v2976_v40   ;;  %v1506_v53 = vmul.f32 %v3467_v49, %v3902_v6  ;;  %v1440_v54 = vmul.f32 %v3902_v6, %v996_v50  ;;  %v1638_v56 = vadd.f32 %v3907_v8, %v1503_v47  ;;  %v1704_v61 = vmax.f32 %v1576_v46, 0.0 }
 0x123   : > { %3284 = vst [vmem:[%s3931_s22 + $0x150] sm:$0xff] %v3136_v45   ;;  %v1577_v57 = vadd.f32 %v3907_v8, %v1442_v48  ;;  %v1504_v58 = vmul.f32 %v3902_v6, %v1252_v55  ;;  %v1768_v0 = vmax.f32 %v1640_v51, 0.0  ;;  %v1702_v1 = vmax.f32 %v1574_v52, 0.0 }
 0x124   : > { %v1641_v59 = vadd.f32 %v3907_v8, %v1506_v53  ;;  %v1575_v60 = vadd.f32 %v3907_v8, %v1440_v54  ;;  %v1766_v5 = vmax.f32 %v1638_v56, 0.0 }
 0x125   : > { %v1705_v62 = vmax.f32 %v1577_v57, 0.0  ;;  %v1639_v63 = vadd.f32 %v3907_v8, %v1504_v58  ;;  %v3406_v4 = vpop.f32.mrb[28].mxu0 }
 0x126   : > { %v1769_v2 = vmax.f32 %v1641_v59, 0.0  ;;  %v1703_v3 = vmax.f32 %v1575_v60, 0.0  ;;  %v1445_v10 = vmul.f32 %v3406_v4, %v3902_v6  ;;  %v3470_v11 = vpop.f32.mrb[28].mxu1  ;;  %v1009_v12 = vpop.f32.mrb[29].mxu0 }
 0x127   : > { %v2991_v7 = vpack.c.bf16 %v1705_v62, %v1704_v61  ;;  %v1767_v9 = vmax.f32 %v1639_v63, 0.0  ;;  %v1509_v15 = vmul.f32 %v3470_v11, %v3902_v6  ;;  %v1443_v16 = vmul.f32 %v3902_v6, %v1009_v12  ;;  %v1265_v17 = vpop.f32.mrb[29].mxu1  ;;  %v3407_v18 = vpop.f32.mrb[30].mxu0 }
 0x128   : > { %v3151_v13 = vpack.c.bf16 %v1769_v2, %v1768_v0  ;;  %v2986_v14 = vpack.c.bf16 %v1703_v3, %v1702_v1  ;;  %v1580_v20 = vadd.f32 %v3907_v8, %v1445_v10  ;;  %v1507_v21 = vmul.f32 %v3902_v6, %v1265_v17  ;;  %v3471_v23 = vpop.f32.mrb[30].mxu1  ;;  %v1012_v24 = vpop.f32.mrb[31].mxu0 }
 0x129   : > { %3255 = vst [vmem:[%s3931_s22 + $0x68] sm:$0xff] %v2991_v7   ;;  %v3146_v19 = vpack.c.bf16 %v1767_v9, %v1766_v5  ;;  %v1446_v22 = vmul.f32 %v3407_v18, %v3902_v6  ;;  %v1644_v25 = vadd.f32 %v3907_v8, %v1509_v15  ;;  %v1578_v26 = vadd.f32 %v3907_v8, %v1443_v16  ;;  %v1268_v29 = vpop.f32.mrb[31].mxu1 }
 0x12a   : > { %3287 = vst [vmem:[%s3931_s22 + $0x168] sm:$0xff] %v3151_v13   ;;  %3254 = vst [vmem:[%s3931_s22 + $0x60] sm:$0xff] %v2986_v14   ;;  %v1510_v27 = vmul.f32 %v3471_v23, %v3902_v6  ;;  %v1444_v28 = vmul.f32 %v3902_v6, %v1012_v24  ;;  %v1642_v30 = vadd.f32 %v3907_v8, %v1507_v21  ;;  %v1708_v35 = vmax.f32 %v1580_v20, 0.0 }
 0x12b   : > { %3286 = vst [vmem:[%s3931_s22 + $0x160] sm:$0xff] %v3146_v19   ;;  %v1581_v31 = vadd.f32 %v3907_v8, %v1446_v22  ;;  %v1508_v32 = vmul.f32 %v3902_v6, %v1268_v29  ;;  %v1772_v38 = vmax.f32 %v1644_v25, 0.0  ;;  %v1706_v39 = vmax.f32 %v1578_v26, 0.0 }
 0x12c   : > { %v1645_v33 = vadd.f32 %v3907_v8, %v1510_v27  ;;  %v1579_v34 = vadd.f32 %v3907_v8, %v1444_v28  ;;  %v1770_v43 = vmax.f32 %v1642_v30, 0.0 }
 0x12d   : > { %v1709_v36 = vmax.f32 %v1581_v31, 0.0  ;;  %v1643_v37 = vadd.f32 %v3907_v8, %v1508_v32  ;;  %v3410_v42 = vpop.f32.mrb[32].mxu0 }
 0x12e   : > { %v1773_v40 = vmax.f32 %v1645_v33, 0.0  ;;  %v1707_v41 = vmax.f32 %v1579_v34, 0.0  ;;  %v1449_v46 = vmul.f32 %v3410_v42, %v3902_v6  ;;  %v3474_v47 = vpop.f32.mrb[32].mxu1  ;;  %v1025_v48 = vpop.f32.mrb[33].mxu0 }
 0x12f   : > { %v3001_v44 = vpack.c.bf16 %v1709_v36, %v1708_v35  ;;  %v1771_v45 = vmax.f32 %v1643_v37, 0.0  ;;  %v1513_v51 = vmul.f32 %v3474_v47, %v3902_v6  ;;  %v1447_v52 = vmul.f32 %v3902_v6, %v1025_v48  ;;  %v1281_v53 = vpop.f32.mrb[33].mxu1  ;;  %v3411_v54 = vpop.f32.mrb[34].mxu0 }
 0x130   : > { %v3161_v49 = vpack.c.bf16 %v1773_v40, %v1772_v38  ;;  %v2996_v50 = vpack.c.bf16 %v1707_v41, %v1706_v39  ;;  %v1584_v56 = vadd.f32 %v3907_v8, %v1449_v46  ;;  %v1511_v57 = vmul.f32 %v3902_v6, %v1281_v53  ;;  %v3475_v59 = vpop.f32.mrb[34].mxu1  ;;  %v1028_v60 = vpop.f32.mrb[35].mxu0 }
 0x131   : > { %3257 = vst [vmem:[%s3931_s22 + $0x78] sm:$0xff] %v3001_v44   ;;  %v3156_v55 = vpack.c.bf16 %v1771_v45, %v1770_v43  ;;  %v1450_v58 = vmul.f32 %v3411_v54, %v3902_v6  ;;  %v1648_v61 = vadd.f32 %v3907_v8, %v1513_v51  ;;  %v1582_v62 = vadd.f32 %v3907_v8, %v1447_v52  ;;  %v1284_v1 = vpop.f32.mrb[35].mxu1 }
 0x132   : > { %3289 = vst [vmem:[%s3931_s22 + $0x178] sm:$0xff] %v3161_v49   ;;  %3256 = vst [vmem:[%s3931_s22 + $0x70] sm:$0xff] %v2996_v50   ;;  %v1514_v63 = vmul.f32 %v3475_v59, %v3902_v6  ;;  %v1448_v0 = vmul.f32 %v3902_v6, %v1028_v60  ;;  %v1646_v2 = vadd.f32 %v3907_v8, %v1511_v57  ;;  %v1712_v9 = vmax.f32 %v1584_v56, 0.0 }
 0x133   : > { %3288 = vst [vmem:[%s3931_s22 + $0x170] sm:$0xff] %v3156_v55   ;;  %v1585_v3 = vadd.f32 %v3907_v8, %v1450_v58  ;;  %v1512_v4 = vmul.f32 %v3902_v6, %v1284_v1  ;;  %v1776_v12 = vmax.f32 %v1648_v61, 0.0  ;;  %v1710_v13 = vmax.f32 %v1582_v62, 0.0 }
 0x134   : > { %v1649_v5 = vadd.f32 %v3907_v8, %v1514_v63  ;;  %v1583_v7 = vadd.f32 %v3907_v8, %v1448_v0  ;;  %v1774_v17 = vmax.f32 %v1646_v2, 0.0 }
 0x135   : > { %v1713_v10 = vmax.f32 %v1585_v3, 0.0  ;;  %v1647_v11 = vadd.f32 %v3907_v8, %v1512_v4  ;;  %v3414_v16 = vpop.f32.mrb[36].mxu0 }
 0x136   : > { %v1777_v14 = vmax.f32 %v1649_v5, 0.0  ;;  %v1711_v15 = vmax.f32 %v1583_v7, 0.0  ;;  %v1453_v20 = vmul.f32 %v3414_v16, %v3902_v6  ;;  %v3478_v21 = vpop.f32.mrb[36].mxu1  ;;  %v1041_v22 = vpop.f32.mrb[37].mxu0 }
 0x137   : > { %v3011_v18 = vpack.c.bf16 %v1713_v10, %v1712_v9  ;;  %v1775_v19 = vmax.f32 %v1647_v11, 0.0  ;;  %v1517_v25 = vmul.f32 %v3478_v21, %v3902_v6  ;;  %v1451_v26 = vmul.f32 %v3902_v6, %v1041_v22  ;;  %v1297_v27 = vpop.f32.mrb[37].mxu1  ;;  %v3415_v28 = vpop.f32.mrb[38].mxu0 }
 0x138   : > { %v3171_v23 = vpack.c.bf16 %v1777_v14, %v1776_v12  ;;  %v3006_v24 = vpack.c.bf16 %v1711_v15, %v1710_v13  ;;  %v1588_v30 = vadd.f32 %v3907_v8, %v1453_v20  ;;  %v1515_v31 = vmul.f32 %v3902_v6, %v1297_v27  ;;  %v3479_v33 = vpop.f32.mrb[38].mxu1  ;;  %v1044_v34 = vpop.f32.mrb[39].mxu0 }
 0x139   : > { %3259 = vst [vmem:[%s3931_s22 + $0x88] sm:$0xff] %v3011_v18   ;;  %v3166_v29 = vpack.c.bf16 %v1775_v19, %v1774_v17  ;;  %v1454_v32 = vmul.f32 %v3415_v28, %v3902_v6  ;;  %v1652_v35 = vadd.f32 %v3907_v8, %v1517_v25  ;;  %v1586_v36 = vadd.f32 %v3907_v8, %v1451_v26  ;;  %v1300_v39 = vpop.f32.mrb[39].mxu1 }
 0x13a   : > { %3291 = vst [vmem:[%s3931_s22 + $0x188] sm:$0xff] %v3171_v23   ;;  %3258 = vst [vmem:[%s3931_s22 + $0x80] sm:$0xff] %v3006_v24   ;;  %v1518_v37 = vmul.f32 %v3479_v33, %v3902_v6  ;;  %v1452_v38 = vmul.f32 %v3902_v6, %v1044_v34  ;;  %v1650_v40 = vadd.f32 %v3907_v8, %v1515_v31  ;;  %v1716_v45 = vmax.f32 %v1588_v30, 0.0 }
 0x13b   : > { %3290 = vst [vmem:[%s3931_s22 + $0x180] sm:$0xff] %v3166_v29   ;;  %v1589_v41 = vadd.f32 %v3907_v8, %v1454_v32  ;;  %v1516_v42 = vmul.f32 %v3902_v6, %v1300_v39  ;;  %v1780_v48 = vmax.f32 %v1652_v35, 0.0  ;;  %v1714_v49 = vmax.f32 %v1586_v36, 0.0 }
 0x13c   : > { %v1653_v43 = vadd.f32 %v3907_v8, %v1518_v37  ;;  %v1587_v44 = vadd.f32 %v3907_v8, %v1452_v38  ;;  %v1778_v53 = vmax.f32 %v1650_v40, 0.0 }
 0x13d   : > { %v1717_v46 = vmax.f32 %v1589_v41, 0.0  ;;  %v1651_v47 = vadd.f32 %v3907_v8, %v1516_v42  ;;  %v3418_v52 = vpop.f32.mrb[40].mxu0 }
 0x13e   : > { %v1781_v50 = vmax.f32 %v1653_v43, 0.0  ;;  %v1715_v51 = vmax.f32 %v1587_v44, 0.0  ;;  %v1457_v56 = vmul.f32 %v3418_v52, %v3902_v6  ;;  %v3482_v57 = vpop.f32.mrb[40].mxu1  ;;  %v1057_v58 = vpop.f32.mrb[41].mxu0 }
 0x13f   : > { %v3021_v54 = vpack.c.bf16 %v1717_v46, %v1716_v45  ;;  %v1779_v55 = vmax.f32 %v1651_v47, 0.0  ;;  %v1521_v61 = vmul.f32 %v3482_v57, %v3902_v6  ;;  %v1455_v62 = vmul.f32 %v3902_v6, %v1057_v58  ;;  %v1313_v63 = vpop.f32.mrb[41].mxu1  ;;  %v3419_v0 = vpop.f32.mrb[42].mxu0 }
 0x140   : > { %v3181_v59 = vpack.c.bf16 %v1781_v50, %v1780_v48  ;;  %v3016_v60 = vpack.c.bf16 %v1715_v51, %v1714_v49  ;;  %v1592_v2 = vadd.f32 %v3907_v8, %v1457_v56  ;;  %v1519_v3 = vmul.f32 %v3902_v6, %v1313_v63  ;;  %v3483_v5 = vpop.f32.mrb[42].mxu1  ;;  %v1060_v7 = vpop.f32.mrb[43].mxu0 }
 0x141   : > { %3261 = vst [vmem:[%s3931_s22 + $0x98] sm:$0xff] %v3021_v54   ;;  %v3176_v1 = vpack.c.bf16 %v1779_v55, %v1778_v53  ;;  %v1458_v4 = vmul.f32 %v3419_v0, %v3902_v6  ;;  %v1656_v9 = vadd.f32 %v3907_v8, %v1521_v61  ;;  %v1590_v10 = vadd.f32 %v3907_v8, %v1455_v62  ;;  %v1316_v13 = vpop.f32.mrb[43].mxu1 }
 0x142   : > { %3293 = vst [vmem:[%s3931_s22 + $0x198] sm:$0xff] %v3181_v59   ;;  %3260 = vst [vmem:[%s3931_s22 + $0x90] sm:$0xff] %v3016_v60   ;;  %v1522_v11 = vmul.f32 %v3483_v5, %v3902_v6  ;;  %v1456_v12 = vmul.f32 %v3902_v6, %v1060_v7  ;;  %v1654_v14 = vadd.f32 %v3907_v8, %v1519_v3  ;;  %v1720_v19 = vmax.f32 %v1592_v2, 0.0 }
 0x143   : > { %3292 = vst [vmem:[%s3931_s22 + $0x190] sm:$0xff] %v3176_v1   ;;  %v1593_v15 = vadd.f32 %v3907_v8, %v1458_v4  ;;  %v1520_v16 = vmul.f32 %v3902_v6, %v1316_v13  ;;  %v1784_v22 = vmax.f32 %v1656_v9, 0.0  ;;  %v1718_v23 = vmax.f32 %v1590_v10, 0.0 }
 0x144   : > { %v1657_v17 = vadd.f32 %v3907_v8, %v1522_v11  ;;  %v1591_v18 = vadd.f32 %v3907_v8, %v1456_v12  ;;  %v1782_v27 = vmax.f32 %v1654_v14, 0.0 }
 0x145   : > { %v1721_v20 = vmax.f32 %v1593_v15, 0.0  ;;  %v1655_v21 = vadd.f32 %v3907_v8, %v1520_v16  ;;  %v3422_v26 = vpop.f32.mrb[44].mxu0 }
 0x146   : > { %v1785_v24 = vmax.f32 %v1657_v17, 0.0  ;;  %v1719_v25 = vmax.f32 %v1591_v18, 0.0  ;;  %v1461_v30 = vmul.f32 %v3422_v26, %v3902_v6  ;;  %v3486_v31 = vpop.f32.mrb[44].mxu1  ;;  %v1073_v32 = vpop.f32.mrb[45].mxu0 }
 0x147   : > { %v3031_v28 = vpack.c.bf16 %v1721_v20, %v1720_v19  ;;  %v1783_v29 = vmax.f32 %v1655_v21, 0.0  ;;  %v1525_v35 = vmul.f32 %v3486_v31, %v3902_v6  ;;  %v1459_v36 = vmul.f32 %v3902_v6, %v1073_v32  ;;  %v1329_v37 = vpop.f32.mrb[45].mxu1  ;;  %v3423_v38 = vpop.f32.mrb[46].mxu0 }
 0x148   : > { %v3191_v33 = vpack.c.bf16 %v1785_v24, %v1784_v22  ;;  %v3026_v34 = vpack.c.bf16 %v1719_v25, %v1718_v23  ;;  %v1596_v40 = vadd.f32 %v3907_v8, %v1461_v30  ;;  %v1523_v41 = vmul.f32 %v3902_v6, %v1329_v37  ;;  %v3487_v43 = vpop.f32.mrb[46].mxu1  ;;  %v1076_v44 = vpop.f32.mrb[47].mxu0 }
 0x149   : > { %3263 = vst [vmem:[%s3931_s22 + $0xa8] sm:$0xff] %v3031_v28   ;;  %v3186_v39 = vpack.c.bf16 %v1783_v29, %v1782_v27  ;;  %v1462_v42 = vmul.f32 %v3423_v38, %v3902_v6  ;;  %v1660_v45 = vadd.f32 %v3907_v8, %v1525_v35  ;;  %v1594_v46 = vadd.f32 %v3907_v8, %v1459_v36  ;;  %v1332_v49 = vpop.f32.mrb[47].mxu1 }
 0x14a   : > { %3295 = vst [vmem:[%s3931_s22 + $0x1a8] sm:$0xff] %v3191_v33   ;;  %3262 = vst [vmem:[%s3931_s22 + $0xa0] sm:$0xff] %v3026_v34   ;;  %v1526_v47 = vmul.f32 %v3487_v43, %v3902_v6  ;;  %v1460_v48 = vmul.f32 %v3902_v6, %v1076_v44  ;;  %v1658_v50 = vadd.f32 %v3907_v8, %v1523_v41  ;;  %v1724_v55 = vmax.f32 %v1596_v40, 0.0 }
 0x14b   : > { %3294 = vst [vmem:[%s3931_s22 + $0x1a0] sm:$0xff] %v3186_v39   ;;  %v1597_v51 = vadd.f32 %v3907_v8, %v1462_v42  ;;  %v1524_v52 = vmul.f32 %v3902_v6, %v1332_v49  ;;  %v1788_v58 = vmax.f32 %v1660_v45, 0.0  ;;  %v1722_v59 = vmax.f32 %v1594_v46, 0.0  ;;  %v4182_v49 = vld [vmem:[%s4299_s3] ss:$0 sm:$0xff] }
 0x14c   : > { %v1661_v53 = vadd.f32 %v3907_v8, %v1526_v47  ;;  %v1595_v54 = vadd.f32 %v3907_v8, %v1460_v48  ;;  %v1786_v63 = vmax.f32 %v1658_v50, 0.0 }
 0x14d   : > { %v1725_v56 = vmax.f32 %v1597_v51, 0.0  ;;  %v1659_v57 = vadd.f32 %v3907_v8, %v1524_v52  ;;  %v3426_v62 = vpop.f32.mrb[48].mxu0 }
 0x14e   : > { %v1789_v60 = vmax.f32 %v1661_v53, 0.0  ;;  %v1723_v61 = vmax.f32 %v1595_v54, 0.0  ;;  %v1465_v2 = vmul.f32 %v3426_v62, %v3902_v6  ;;  %v3490_v3 = vpop.f32.mrb[48].mxu1  ;;  %v1089_v4 = vpop.f32.mrb[49].mxu0 }
 0x14f   : > { %v3041_v0 = vpack.c.bf16 %v1725_v56, %v1724_v55  ;;  %v1787_v1 = vmax.f32 %v1659_v57, 0.0  ;;  %v1529_v9 = vmul.f32 %v3490_v3, %v3902_v6  ;;  %v1463_v10 = vmul.f32 %v3902_v6, %v1089_v4  ;;  %v1345_v11 = vpop.f32.mrb[49].mxu1  ;;  %v3427_v12 = vpop.f32.mrb[50].mxu0 }
 0x150   : > { %v3201_v5 = vpack.c.bf16 %v1789_v60, %v1788_v58  ;;  %v3036_v7 = vpack.c.bf16 %v1723_v61, %v1722_v59  ;;  %v1600_v14 = vadd.f32 %v3907_v8, %v1465_v2  ;;  %v1527_v15 = vmul.f32 %v3902_v6, %v1345_v11  ;;  %v3491_v17 = vpop.f32.mrb[50].mxu1  ;;  %v1092_v18 = vpop.f32.mrb[51].mxu0 }
 0x151   : > { %3265 = vst [vmem:[%s3931_s22 + $0xb8] sm:$0xff] %v3041_v0   ;;  %v3196_v13 = vpack.c.bf16 %v1787_v1, %v1786_v63  ;;  %v1466_v16 = vmul.f32 %v3427_v12, %v3902_v6  ;;  %v1664_v19 = vadd.f32 %v3907_v8, %v1529_v9  ;;  %v1598_v20 = vadd.f32 %v3907_v8, %v1463_v10  ;;  %v1348_v23 = vpop.f32.mrb[51].mxu1 }
 0x152   : > { %3297 = vst [vmem:[%s3931_s22 + $0x1b8] sm:$0xff] %v3201_v5   ;;  %3264 = vst [vmem:[%s3931_s22 + $0xb0] sm:$0xff] %v3036_v7   ;;  %v1530_v21 = vmul.f32 %v3491_v17, %v3902_v6  ;;  %v1464_v22 = vmul.f32 %v3902_v6, %v1092_v18  ;;  %v1662_v24 = vadd.f32 %v3907_v8, %v1527_v15  ;;  %v1728_v29 = vmax.f32 %v1600_v14, 0.0 }
 0x153   : > { %3296 = vst [vmem:[%s3931_s22 + $0x1b0] sm:$0xff] %v3196_v13   ;;  %v1601_v25 = vadd.f32 %v3907_v8, %v1466_v16  ;;  %v1528_v26 = vmul.f32 %v3902_v6, %v1348_v23  ;;  %v1792_v32 = vmax.f32 %v1664_v19, 0.0  ;;  %v1726_v33 = vmax.f32 %v1598_v20, 0.0  ;;  %v4173_v6 = vld [vmem:[%s4298_s2] ss:$0 sm:$0xff] }
 0x154   : > { %v1665_v27 = vadd.f32 %v3907_v8, %v1530_v21  ;;  %v1599_v28 = vadd.f32 %v3907_v8, %v1464_v22  ;;  %v1790_v37 = vmax.f32 %v1662_v24, 0.0 }
 0x155   : > { %v1729_v30 = vmax.f32 %v1601_v25, 0.0  ;;  %v1663_v31 = vadd.f32 %v3907_v8, %v1528_v26  ;;  %v3430_v36 = vpop.f32.mrb[52].mxu0 }
 0x156   : > { %v1793_v34 = vmax.f32 %v1665_v27, 0.0  ;;  %v1727_v35 = vmax.f32 %v1599_v28, 0.0  ;;  %v1469_v40 = vmul.f32 %v4173_v6, %v3430_v36  ;;  %v3494_v41 = vpop.f32.mrb[52].mxu1  ;;  %v1105_v42 = vpop.f32.mrb[53].mxu0 }
 0x157   : > { %v3051_v38 = vpack.c.bf16 %v1729_v30, %v1728_v29  ;;  %v1791_v39 = vmax.f32 %v1663_v31, 0.0  ;;  %v1533_v44 = vmul.f32 %v4173_v6, %v3494_v41  ;;  %v1467_v45 = vmul.f32 %v4173_v6, %v1105_v42  ;;  %v1361_v46 = vpop.f32.mrb[53].mxu1  ;;  %v3431_v47 = vpop.f32.mrb[54].mxu0 }
 0x158   : > { %v3211_v8 = vpack.c.bf16 %v1793_v34, %v1792_v32  ;;  %v3046_v43 = vpack.c.bf16 %v1727_v35, %v1726_v33  ;;  %v1604_v50 = vadd.f32 %v4182_v49, %v1469_v40  ;;  %v1531_v51 = vmul.f32 %v4173_v6, %v1361_v46  ;;  %v3495_v53 = vpop.f32.mrb[54].mxu1  ;;  %v1108_v54 = vpop.f32.mrb[55].mxu0 }
 0x159   : > { %3267 = vst [vmem:[%s3931_s22 + $0xc8] sm:$0xff] %v3051_v38   ;;  %v3206_v48 = vpack.c.bf16 %v1791_v39, %v1790_v37  ;;  %v1470_v52 = vmul.f32 %v4173_v6, %v3431_v47  ;;  %v1668_v55 = vadd.f32 %v4182_v49, %v1533_v44  ;;  %v1602_v56 = vadd.f32 %v4182_v49, %v1467_v45  ;;  %v1364_v59 = vpop.f32.mrb[55].mxu1 }
 0x15a   : > { %3299 = vst [vmem:[%s3931_s22 + $0x1c8] sm:$0xff] %v3211_v8   ;;  %3266 = vst [vmem:[%s3931_s22 + $0xc0] sm:$0xff] %v3046_v43   ;;  %v1534_v57 = vmul.f32 %v4173_v6, %v3495_v53  ;;  %v1468_v58 = vmul.f32 %v4173_v6, %v1108_v54  ;;  %v1666_v60 = vadd.f32 %v4182_v49, %v1531_v51  ;;  %v1732_v1 = vmax.f32 %v1604_v50, 0.0 }
 0x15b   : > { %3298 = vst [vmem:[%s3931_s22 + $0x1c0] sm:$0xff] %v3206_v48   ;;  %v1605_v61 = vadd.f32 %v4182_v49, %v1470_v52  ;;  %v1532_v62 = vmul.f32 %v4173_v6, %v1364_v59  ;;  %v1796_v4 = vmax.f32 %v1668_v55, 0.0  ;;  %v1730_v5 = vmax.f32 %v1602_v56, 0.0 }
 0x15c   : > { %v1669_v63 = vadd.f32 %v4182_v49, %v1534_v57  ;;  %v1603_v0 = vadd.f32 %v4182_v49, %v1468_v58  ;;  %v1794_v11 = vmax.f32 %v1666_v60, 0.0 }
 0x15d   : > { %v1733_v2 = vmax.f32 %v1605_v61, 0.0  ;;  %v1667_v3 = vadd.f32 %v4182_v49, %v1532_v62  ;;  %v3434_v10 = vpop.f32.mrb[56].mxu0 }
 0x15e   : > { %v1797_v7 = vmax.f32 %v1669_v63, 0.0  ;;  %v1731_v9 = vmax.f32 %v1603_v0, 0.0  ;;  %v1473_v14 = vmul.f32 %v4173_v6, %v3434_v10  ;;  %v3498_v15 = vpop.f32.mrb[56].mxu1  ;;  %v1121_v16 = vpop.f32.mrb[57].mxu0 }
 0x15f   : > { %v3061_v12 = vpack.c.bf16 %v1733_v2, %v1732_v1  ;;  %v1795_v13 = vmax.f32 %v1667_v3, 0.0  ;;  %v1537_v19 = vmul.f32 %v4173_v6, %v3498_v15  ;;  %v1471_v20 = vmul.f32 %v4173_v6, %v1121_v16  ;;  %v1377_v21 = vpop.f32.mrb[57].mxu1  ;;  %v3435_v22 = vpop.f32.mrb[58].mxu0 }
 0x160   : > { %v3221_v17 = vpack.c.bf16 %v1797_v7, %v1796_v4  ;;  %v3056_v18 = vpack.c.bf16 %v1731_v9, %v1730_v5  ;;  %v1608_v24 = vadd.f32 %v4182_v49, %v1473_v14  ;;  %v1535_v25 = vmul.f32 %v4173_v6, %v1377_v21  ;;  %v3499_v27 = vpop.f32.mrb[58].mxu1  ;;  %v1124_v28 = vpop.f32.mrb[59].mxu0 }
 0x161   : > { %3269 = vst [vmem:[%s3931_s22 + $0xd8] sm:$0xff] %v3061_v12   ;;  %v3216_v23 = vpack.c.bf16 %v1795_v13, %v1794_v11  ;;  %v1474_v26 = vmul.f32 %v4173_v6, %v3435_v22  ;;  %v1672_v29 = vadd.f32 %v4182_v49, %v1537_v19  ;;  %v1606_v30 = vadd.f32 %v4182_v49, %v1471_v20  ;;  %v1380_v33 = vpop.f32.mrb[59].mxu1 }
 0x162   : > { %3301 = vst [vmem:[%s3931_s22 + $0x1d8] sm:$0xff] %v3221_v17   ;;  %3268 = vst [vmem:[%s3931_s22 + $0xd0] sm:$0xff] %v3056_v18   ;;  %v1538_v31 = vmul.f32 %v4173_v6, %v3499_v27  ;;  %v1472_v32 = vmul.f32 %v4173_v6, %v1124_v28  ;;  %v1670_v34 = vadd.f32 %v4182_v49, %v1535_v25  ;;  %v1736_v39 = vmax.f32 %v1608_v24, 0.0 }
 0x163   : > { %3300 = vst [vmem:[%s3931_s22 + $0x1d0] sm:$0xff] %v3216_v23   ;;  %v1609_v35 = vadd.f32 %v4182_v49, %v1474_v26  ;;  %v1536_v36 = vmul.f32 %v4173_v6, %v1380_v33  ;;  %v1800_v42 = vmax.f32 %v1672_v29, 0.0  ;;  %v1734_v8 = vmax.f32 %v1606_v30, 0.0 }
 0x164   : > { %v1673_v37 = vadd.f32 %v4182_v49, %v1538_v31  ;;  %v1607_v38 = vadd.f32 %v4182_v49, %v1472_v32  ;;  %v1798_v46 = vmax.f32 %v1670_v34, 0.0 }
 0x165   : > { %v1737_v40 = vmax.f32 %v1609_v35, 0.0  ;;  %v1671_v41 = vadd.f32 %v4182_v49, %v1536_v36  ;;  %v3438_v45 = vpop.f32.mrb[60].mxu0 }
 0x166   : > { %v1801_v43 = vmax.f32 %v1673_v37, 0.0  ;;  %v1735_v44 = vmax.f32 %v1607_v38, 0.0  ;;  %v1477_v50 = vmul.f32 %v4173_v6, %v3438_v45  ;;  %v3502_v51 = vpop.f32.mrb[60].mxu1  ;;  %v1137_v52 = vpop.f32.mrb[61].mxu0 }
 0x167   : > { %v3071_v47 = vpack.c.bf16 %v1737_v40, %v1736_v39  ;;  %v1799_v48 = vmax.f32 %v1671_v41, 0.0  ;;  %v1541_v55 = vmul.f32 %v4173_v6, %v3502_v51  ;;  %v1475_v56 = vmul.f32 %v4173_v6, %v1137_v52  ;;  %v1393_v57 = vpop.f32.mrb[61].mxu1  ;;  %v3439_v58 = vpop.f32.mrb[62].mxu0 }
 0x168   : > { %v3231_v53 = vpack.c.bf16 %v1801_v43, %v1800_v42  ;;  %v3066_v54 = vpack.c.bf16 %v1735_v44, %v1734_v8  ;;  %v1612_v60 = vadd.f32 %v4182_v49, %v1477_v50  ;;  %v1539_v61 = vmul.f32 %v4173_v6, %v1393_v57  ;;  %v3503_v63 = vpop.f32.mrb[62].mxu1  ;;  %v1140_v0 = vpop.f32.mrb[63].mxu0 }
 0x169   : > { %3271 = vst [vmem:[%s3931_s22 + $0xe8] sm:$0xff] %v3071_v47   ;;  %v3226_v59 = vpack.c.bf16 %v1799_v48, %v1798_v46  ;;  %v1478_v62 = vmul.f32 %v4173_v6, %v3439_v58  ;;  %v1676_v1 = vadd.f32 %v4182_v49, %v1541_v55  ;;  %v1610_v2 = vadd.f32 %v4182_v49, %v1475_v56  ;;  %v1396_v5 = vpop.f32.mrb[63].mxu1 }
 0x16a   : > { %3303 = vst [vmem:[%s3931_s22 + $0x1e8] sm:$0xff] %v3231_v53   ;;  %3270 = vst [vmem:[%s3931_s22 + $0xe0] sm:$0xff] %v3066_v54   ;;  %v1542_v3 = vmul.f32 %v4173_v6, %v3503_v63  ;;  %v1476_v4 = vmul.f32 %v4173_v6, %v1140_v0  ;;  %v1674_v7 = vadd.f32 %v4182_v49, %v1539_v61  ;;  %v1740_v13 = vmax.f32 %v1612_v60, 0.0 }
 0x16b   : > { %3302 = vst [vmem:[%s3931_s22 + $0x1e0] sm:$0xff] %v3226_v59   ;;  %v1613_v9 = vadd.f32 %v4182_v49, %v1478_v62  ;;  %v1540_v10 = vmul.f32 %v4173_v6, %v1396_v5  ;;  %v1804_v16 = vmax.f32 %v1676_v1, 0.0  ;;  %v1738_v17 = vmax.f32 %v1610_v2, 0.0 }
 0x16c   : > { %v1677_v11 = vadd.f32 %v4182_v49, %v1542_v3  ;;  %v1611_v12 = vadd.f32 %v4182_v49, %v1476_v4  ;;  %v1802_v6 = vmax.f32 %v1674_v7, 0.0 }
 0x16d   : > { %v1741_v14 = vmax.f32 %v1613_v9, 0.0  ;;  %v1675_v15 = vadd.f32 %v4182_v49, %v1540_v10 }
 0x16e   : > { %v1805_v18 = vmax.f32 %v1677_v11, 0.0  ;;  %v1739_v19 = vmax.f32 %v1611_v12, 0.0 }
 0x16f   : > { %v3081_v20 = vpack.c.bf16 %v1741_v14, %v1740_v13  ;;  %v1803_v21 = vmax.f32 %v1675_v15, 0.0 }
 0x170   : > { %v3241_v22 = vpack.c.bf16 %v1805_v18, %v1804_v16  ;;  %v3076_v23 = vpack.c.bf16 %v1739_v19, %v1738_v17 }
 0x171   : > { %3273 = vst [vmem:[%s3931_s22 + $0xf8] sm:$0xff] %v3081_v20   ;;  %v3236_v49 = vpack.c.bf16 %v1803_v21, %v1802_v6 }
 0x172   : > { %3305 = vst [vmem:[%s3931_s22 + $0x1f8] sm:$0xff] %v3241_v22   ;;  %3272 = vst [vmem:[%s3931_s22 + $0xf0] sm:$0xff] %v3076_v23  }
 0x173   : > { %3304 = vst [vmem:[%s3931_s22 + $0x1f0] sm:$0xff] %v3236_v49  }
 0x174   : > { %3631 = shalt.err (!%p3628_p3)
}
 0x175   : > { %s3632_s13 = scalar_lea.hbm %s4245_s8, 8192  ;;  %s3636_s22 = scalar_lea.hbm %s4300_s4, 16384 }
 0x176   : > { %p3633_p4 = scmp.ne.s32.totalorder %s4245_s8, %s3632_s13  ;;  %p3637_p9 = scmp.lt.u32.totalorder %s4245_s8, %s4300_s4 }
 0x177   : > { %p3638_p10 = scmp.lt.u32.totalorder %s3636_s22, %s3632_s13  ;;  %p3640_p12 = scmp.lt.u32.totalorder %s3632_s13, %s4245_s8 }
 0x178   : > { %p3634_p7 = pnand %p3633_p4, %p3749_p5 }
 0x179   : > { %p3639_p11 = por %p3638_p10, %p3637_p9 }
 0x17a   : > { %p3635_p8 = pneg %p3634_p7 }
 0x17b   : > { %p3641_p13 = por %p3640_p12, %p3639_p11 }
 0x17d   : > { %p3642_p0 = pnand %p3641_p13, %p3635_p8 }
 0x17f   : > { %3645 = shalt.err (!%p3642_p0)
}
 0x180   : > { %s3684_s28 = smov 64   ;;  %s3685_s29 = smov 4  }
 0x181   : > { %3508 = dma.vmem_to_hbm [thread:$0]  (%p3749_p5), %s4247_s5, 8192, %s4245_s8, %s4255_s19, %s3684_s28, %s3684_s28, %s3685_s29  }
 0x182 PF: > { %p3514_p1 = scmp.ge.s32.totalorder %s3680_s18, 2  ;;  %s2475_s30 = sand.u32 1, %s3668_s15  }
 0x183   : > { %s2476_s6 = scalar_lea.sflag [#allocation3], %s2475_s30 }
 0x184   : > { %p3511_p2 = pnand %p3514_p1, %p3753_p6 }
 0x186   : > { %3663 = dma.done.wait (!%p3511_p2), %s2476_s6, 8192  }
 0x187   : > { %3665 = vsyncadd (!%p3511_p2), %s2476_s6, 4294959104  ;;  %p14_p3 = scmp.ge.s32.totalorder %s3736_s21, 4   ;;  %s4303_s15 = smov %s3672_s16 }
 0x188   : > { %s4304_s16 = smov %s3676_s17  ;;  %s4305_s17 = smov %s3747_s24 }
 0x189   : > { %s4306_s18 = smov %s3736_s21  ;;  %16 = sbr.rel (!%p14_p3) target bundleno = 3 (0x3), region = 71 }
 0x190   :  { %2481 = vsyncpa [#allocation3], 1 }
 0x191   :  { %2483 = vsyncpa [#allocation3 + $0x1], 1 }

</bundles_post_ra>
